<compile_context>
chip_gen: v6e
topology: v6e:2x2x1
jax: 0.10.0
libtpu: 0.0.40
codegen_flags: <defaults>
</compile_context>

<pallas_src>
import functools

import numpy as np

import jax
import jax.numpy as jnp
from jax.experimental import pallas as pl
from jax.experimental.pallas import tpu as pltpu


def _round_up(x: int, m: int) -> int:
    return (x + m - 1) // m * m


def _cdiv(a: int, b: int) -> int:
    return -(-a // b)


# ---------------------------------------------------------------------------
# Fused kernel: full MLP on one (tm, c_in) row tile.
# ---------------------------------------------------------------------------
def _radial_mlp_kernel(x_ref, w_ref, b_ref, g_ref, beta_ref, o_ref, *,
                       channel_sizes, compute_dtype, eps):
    n_layers = len(channel_sizes) - 1
    c_in = channel_sizes[0]
    c_out = channel_sizes[-1]

    y = x_ref[...]                                    # (tm, c_in): true input width
    for l in range(n_layers):                         # unrolled; n_layers static & small
        # Layer 0 contracts over the true c_in.  (Weight rows beyond c_in are
        # zero in the packed stack -- keep that invariant if this slice is
        # ever removed, otherwise pad-column garbage would leak into layer 0.)
        w = w_ref[0][:c_in, :] if l == 0 else w_ref[l]
        y = jnp.dot(y.astype(compute_dtype), w,
                    preferred_element_type=jnp.float32)
        y = y + b_ref[l]                              # zero-padded bias: pad lanes stay 0

        if l < n_layers - 1:
            cout = channel_sizes[l + 1]
            inv_c = 1.0 / float(cout)
            # One-pass LayerNorm stats over the true `cout` channels; pad lanes
            # are exactly zero so whole-row sums already exclude them.
            mean = jnp.sum(y, axis=-1, keepdims=True) * inv_c
            msq = jnp.sum(y * y, axis=-1, keepdims=True) * inv_c
            var = jnp.maximum(msq - mean * mean, 0.0)   # clamp: cancellation insurance
            y = (y - mean) * jax.lax.rsqrt(var + eps)
            y = y * g_ref[l] + beta_ref[l]            # zero-padded gamma/beta -> pad lanes back to 0
            # SiLU: exp on the EUP, approx reciprocal keeps the divide off the
            # VPU (matters on v5e's f32-only VALU / single vst slot).
            y = y * pl.reciprocal(1.0 + jnp.exp(-y), approx=True)

    # Store only the real output channels (lane-masked store, no padded slab).
    o_ref[...] = y[:, :c_out].astype(o_ref.dtype)


# ---------------------------------------------------------------------------
# One-time parameter packing (do this at init, NOT per forward call).
# ---------------------------------------------------------------------------
def pack_radial_params(params, *, compute_dtype=jnp.bfloat16):
    channel_sizes = (int(params[0]["w"].shape[0]),) + tuple(
        int(p["w"].shape[1]) for p in params)
    n_layers = len(params)
    c_pad = _round_up(max(channel_sizes), 128)
    n_ln = max(n_layers - 1, 1)

    w_stk = np.zeros((n_layers, c_pad, c_pad), np.float32)
    b_stk = np.zeros((n_layers, 1, c_pad), np.float32)
    g_stk = np.zeros((n_ln, 1, c_pad), np.float32)
    be_stk = np.zeros((n_ln, 1, c_pad), np.float32)
    for l, p in enumerate(params):
        ci, co = p["w"].shape
        w_stk[l, :ci, :co] = np.asarray(p["w"], np.float32)
        b_stk[l, 0, :co] = np.asarray(p["b"], np.float32).reshape(-1)
        if l < n_layers - 1:
            g_stk[l, 0, :co] = np.asarray(p["gamma"], np.float32).reshape(-1)
            be_stk[l, 0, :co] = np.asarray(p["beta"], np.float32).reshape(-1)

    return dict(
        channel_sizes=channel_sizes,
        c_pad=c_pad,
        compute_dtype=compute_dtype,
        w_stk=jnp.asarray(w_stk, compute_dtype),
        b_stk=jnp.asarray(b_stk),
        g_stk=jnp.asarray(g_stk),
        be_stk=jnp.asarray(be_stk),
    )


# ---------------------------------------------------------------------------
# Forward: single pallas_call, x streamed at true shape, output at true shape.
# ---------------------------------------------------------------------------
def radial_function_forward(packed, x, *, tm=1024, min_grid_steps=4,
                            eps=1e-5, out_dtype=None):
    n, c_in = x.shape
    channel_sizes = packed["channel_sizes"]
    assert c_in == channel_sizes[0], "input channel mismatch"
    n_layers = len(channel_sizes) - 1
    c_pad = packed["c_pad"]
    c_out = channel_sizes[-1]
    n_ln = packed["g_stk"].shape[0]
    out_dtype = x.dtype if out_dtype is None else out_dtype   # bf16 x/out halves HBM streams

    # Row tiling: cap the tile so the grid has >= min_grid_steps steps (keeps
    # both v7x TensorCores busy), keep it 8-row aligned, and let Pallas mask
    # the partial tail block (no row padding, no x materialization).
    tm_cap = max(8, _round_up(_cdiv(n, min_grid_steps), 8))
    tm_eff = min(tm, tm_cap)
    grid = _cdiv(n, tm_eff)

    kernel = functools.partial(
        _radial_mlp_kernel, channel_sizes=channel_sizes,
        compute_dtype=packed["compute_dtype"], eps=eps)

    nbytes = lambda a: a.size * a.dtype.itemsize
    cost = pl.CostEstimate(
        flops=2 * n * (c_in * c_pad + (n_layers - 1) * c_pad * c_pad),
        transcendentals=n * (n_layers - 1) * c_pad,
        bytes_accessed=(nbytes(x) + n * c_out * jnp.dtype(out_dtype).itemsize
                        + nbytes(packed["w_stk"]) + nbytes(packed["b_stk"])
                        + nbytes(packed["g_stk"]) + nbytes(packed["be_stk"])))

    return pl.pallas_call(
        kernel,
        out_shape=jax.ShapeDtypeStruct((n, c_out), out_dtype),
        grid_spec=pltpu.PrefetchScalarGridSpec(
            num_scalar_prefetch=0,
            grid=(grid,),
            in_specs=[
                # x rows at true width (last dim == full array dim -> legal block).
                pl.BlockSpec((tm_eff, c_in), lambda i: (i, 0)),
                # Constant-index-map parameter stacks: single-buffer them.
                pl.BlockSpec((n_layers, c_pad, c_pad), lambda i: (0, 0, 0),
                             pipeline_mode=pl.Buffered(1)),
                pl.BlockSpec((n_layers, 1, c_pad), lambda i: (0, 0, 0),
                             pipeline_mode=pl.Buffered(1)),
                pl.BlockSpec((n_ln, 1, c_pad), lambda i: (0, 0, 0),
                             pipeline_mode=pl.Buffered(1)),
                pl.BlockSpec((n_ln, 1, c_pad), lambda i: (0, 0, 0),
                             pipeline_mode=pl.Buffered(1)),
            ],
            out_specs=pl.BlockSpec((tm_eff, c_out), lambda i: (i, 0)),
        ),
        compiler_params=pltpu.CompilerParams(
            dimension_semantics=("parallel",)),
        cost_estimate=cost,
    )(x, packed["w_stk"], packed["b_stk"], packed["g_stk"], packed["be_stk"])


# ---------------------------------------------------------------------------
# Parameters (torch-default init) + pure-JAX f32 reference.
# ---------------------------------------------------------------------------
def init_radial_function_params(key, channels_list):
    params = []
    n_layers = len(channels_list) - 1
    in_c = channels_list[0]
    for i in range(1, len(channels_list)):
        out_c = channels_list[i]
        key, kw, kb = jax.random.split(key, 3)
        bound = 1.0 / jnp.sqrt(jnp.float32(in_c))
        w = jax.random.uniform(kw, (in_c, out_c), jnp.float32, -bound, bound)
        b = jax.random.uniform(kb, (1, out_c), jnp.float32, -bound, bound)
        params.append(dict(w=w, b=b,
                           gamma=jnp.ones((1, out_c), jnp.float32),
                           beta=jnp.zeros((1, out_c), jnp.float32),
                           is_last=(i == n_layers)))
        in_c = out_c
    return params


def radial_function_reference(params, x):
    y = x
    for p in params:
        y = y @ p["w"] + p["b"]
        if not p["is_last"]:
            mean = jnp.mean(y, axis=-1, keepdims=True)
            var = jnp.mean(jnp.square(y - mean), axis=-1, keepdims=True)
            y = (y - mean) / jnp.sqrt(var + 1e-5)
            y = y * p["gamma"] + p["beta"]
            y = y * jax.nn.sigmoid(y)
    return y


if __name__ == "__main__":
    key = jax.random.PRNGKey(0)

    channels_list = [32, 64, 32]   # RadialFunction channels_list
    n_rows = 1000                  # non-multiple of the row tile (exercises tail masking)

    key, kp, kx = jax.random.split(key, 3)
    params = init_radial_function_params(kp, channels_list)
    x = jax.random.normal(kx, (n_rows, channels_list[0]), jnp.float32)

    packed = pack_radial_params(params)          # one-time, at init (constant params)
    out = radial_function_forward(packed, x)     # x and output at true shapes
    out = jax.block_until_ready(out)

    ref = radial_function_reference(params, x)
    assert out.shape == (n_rows, channels_list[-1])
    # bf16 MXU operands (f32 accumulation) + approx-reciprocal SiLU -> ~1e-2 deviation.
    assert jnp.allclose(out, ref, atol=5e-2, rtol=5e-2), "mismatch vs reference"

    print("KERNEL_OK")
</pallas_src>

<mosaic_0001>
module attributes {stable_mosaic.version = 11 : i64} {
  func.func @_radial_mlp_kernel(%arg0: i32, %arg1: memref<256x32xf32, #tpu.memory_space<vmem>>, %arg2: memref<2x128x128xbf16, #tpu.memory_space<vmem>>, %arg3: memref<2x1x128xf32, #tpu.memory_space<vmem>>, %arg4: memref<1x1x128xf32, #tpu.memory_space<vmem>>, %arg5: memref<1x1x128xf32, #tpu.memory_space<vmem>>, %arg6: memref<256x32xf32, #tpu.memory_space<vmem>>) attributes {dimension_semantics = [#tpu.dimension_semantics<parallel>], iteration_bounds = array<i64: 4>, scalar_prefetch = 0 : i64, scratch_operands = 0 : i64, tpu.core_type = #tpu.core_type<tc>, window_params = [{transform_indices = @transform_0, window_bounds = array<i64: 256, 32>}, {pipeline_mode = #tpu.pipeline_mode<synchronous>, transform_indices = @transform_1, window_bounds = array<i64: 2, 128, 128>}, {pipeline_mode = #tpu.pipeline_mode<synchronous>, transform_indices = @transform_2, window_bounds = array<i64: 2, 1, 128>}, {pipeline_mode = #tpu.pipeline_mode<synchronous>, transform_indices = @transform_3, window_bounds = array<i64: 1, 1, 128>}, {pipeline_mode = #tpu.pipeline_mode<synchronous>, transform_indices = @transform_4, window_bounds = array<i64: 1, 1, 128>}, {transform_indices = @transform_5, window_bounds = array<i64: 256, 32>}]} {
    %c0 = arith.constant 0 : index
    %c0_0 = arith.constant 0 : index
    %0 = vector.load %arg1[%c0, %c0_0] : memref<256x32xf32, #tpu.memory_space<vmem>>, vector<256x32xf32>
    %c0_1 = arith.constant 0 : index
    %c0_2 = arith.constant 0 : index
    %c0_3 = arith.constant 0 : index
    %1 = vector.load %arg2[%c0_1, %c0_2, %c0_3] : memref<2x128x128xbf16, #tpu.memory_space<vmem>>, vector<1x128x128xbf16>
    %2 = vector.shape_cast %1 : vector<1x128x128xbf16> to vector<128x128xbf16>
    %3 = vector.extract_strided_slice %2 {offsets = [0, 0], sizes = [32, 128], strides = [1, 1]} : vector<128x128xbf16> to vector<32x128xbf16>
    %4 = arith.truncf %0 : vector<256x32xf32> to vector<256x32xbf16>
    %cst = arith.constant dense<0.000000e+00> : vector<256x128xf32>
    %5 = tpu.matmul %4, %3, %cst {dimension_numbers = #tpu.dot_dimension_numbers<[1], [0], [0], [1], [0, 0, 1, 1], [], []>} : vector<256x32xbf16>, vector<32x128xbf16>, vector<256x128xf32> -> vector<256x128xf32>
    %c0_4 = arith.constant 0 : index
    %c0_5 = arith.constant 0 : index
    %c0_6 = arith.constant 0 : index
    %6 = vector.load %arg3[%c0_4, %c0_5, %c0_6] : memref<2x1x128xf32, #tpu.memory_space<vmem>>, vector<1x1x128xf32>
    %7 = vector.shape_cast %6 : vector<1x1x128xf32> to vector<1x128xf32>
    %8 = vector.broadcast %7 : vector<1x128xf32> to vector<256x128xf32>
    %9 = arith.addf %5, %8 : vector<256x128xf32>
    %cst_7 = arith.constant dense<0.000000e+00> : vector<256xf32>
    %10 = vector.multi_reduction <add>, %9, %cst_7 [1] : vector<256x128xf32> to vector<256xf32>
    %11 = vector.shape_cast %10 : vector<256xf32> to vector<256x1xf32>
    %cst_8 = arith.constant 1.562500e-02 : f32
    %12 = vector.broadcast %cst_8 : f32 to vector<256x1xf32>
    %13 = arith.mulf %11, %12 : vector<256x1xf32>
    %14 = arith.mulf %9, %9 : vector<256x128xf32>
    %cst_9 = arith.constant dense<0.000000e+00> : vector<256xf32>
    %15 = vector.multi_reduction <add>, %14, %cst_9 [1] : vector<256x128xf32> to vector<256xf32>
    %16 = vector.shape_cast %15 : vector<256xf32> to vector<256x1xf32>
    %cst_10 = arith.constant 1.562500e-02 : f32
    %17 = vector.broadcast %cst_10 : f32 to vector<256x1xf32>
    %18 = arith.mulf %16, %17 : vector<256x1xf32>
    %19 = arith.mulf %13, %13 : vector<256x1xf32>
    %20 = arith.subf %18, %19 : vector<256x1xf32>
    %cst_11 = arith.constant 0.000000e+00 : f32
    %21 = vector.broadcast %cst_11 : f32 to vector<256x1xf32>
    %22 = arith.maximumf %20, %21 : vector<256x1xf32>
    %23 = vector.broadcast %13 : vector<256x1xf32> to vector<256x128xf32>
    %24 = arith.subf %9, %23 : vector<256x128xf32>
    %cst_12 = arith.constant 9.99999974E-6 : f32
    %25 = vector.broadcast %cst_12 : f32 to vector<256x1xf32>
    %26 = arith.addf %22, %25 : vector<256x1xf32>
    %27 = math.rsqrt %26 : vector<256x1xf32>
    %28 = vector.broadcast %27 : vector<256x1xf32> to vector<256x128xf32>
    %29 = arith.mulf %24, %28 : vector<256x128xf32>
    %c0_13 = arith.constant 0 : index
    %c0_14 = arith.constant 0 : index
    %c0_15 = arith.constant 0 : index
    %30 = vector.load %arg4[%c0_13, %c0_14, %c0_15] : memref<1x1x128xf32, #tpu.memory_space<vmem>>, vector<1x1x128xf32>
    %31 = vector.shape_cast %30 : vector<1x1x128xf32> to vector<1x128xf32>
    %32 = vector.broadcast %31 : vector<1x128xf32> to vector<256x128xf32>
    %33 = arith.mulf %29, %32 : vector<256x128xf32>
    %c0_16 = arith.constant 0 : index
    %c0_17 = arith.constant 0 : index
    %c0_18 = arith.constant 0 : index
    %34 = vector.load %arg5[%c0_16, %c0_17, %c0_18] : memref<1x1x128xf32, #tpu.memory_space<vmem>>, vector<1x1x128xf32>
    %35 = vector.shape_cast %34 : vector<1x1x128xf32> to vector<1x128xf32>
    %36 = vector.broadcast %35 : vector<1x128xf32> to vector<256x128xf32>
    %37 = arith.addf %33, %36 : vector<256x128xf32>
    %cst_19 = arith.constant 0.000000e+00 : f32
    %38 = vector.broadcast %cst_19 : f32 to vector<256x128xf32>
    %39 = arith.subf %38, %37 : vector<256x128xf32>
    %40 = math.exp %39 : vector<256x128xf32>
    %cst_20 = arith.constant 1.000000e+00 : f32
    %41 = vector.broadcast %cst_20 : f32 to vector<256x128xf32>
    %42 = arith.addf %41, %40 : vector<256x128xf32>
    %43 = tpu.reciprocal %42 {approx = true} : vector<256x128xf32> -> vector<256x128xf32>
    %44 = arith.mulf %37, %43 : vector<256x128xf32>
    %c1 = arith.constant 1 : index
    %c0_21 = arith.constant 0 : index
    %c0_22 = arith.constant 0 : index
    %45 = vector.load %arg2[%c1, %c0_21, %c0_22] : memref<2x128x128xbf16, #tpu.memory_space<vmem>>, vector<1x128x128xbf16>
    %46 = vector.shape_cast %45 : vector<1x128x128xbf16> to vector<128x128xbf16>
    %47 = arith.truncf %44 : vector<256x128xf32> to vector<256x128xbf16>
    %cst_23 = arith.constant dense<0.000000e+00> : vector<256x128xf32>
    %48 = tpu.matmul %47, %46, %cst_23 {dimension_numbers = #tpu.dot_dimension_numbers<[1], [0], [0], [1], [0, 0, 1, 1], [], []>} : vector<256x128xbf16>, vector<128x128xbf16>, vector<256x128xf32> -> vector<256x128xf32>
    %c1_24 = arith.constant 1 : index
    %c0_25 = arith.constant 0 : index
    %c0_26 = arith.constant 0 : index
    %49 = vector.load %arg3[%c1_24, %c0_25, %c0_26] : memref<2x1x128xf32, #tpu.memory_space<vmem>>, vector<1x1x128xf32>
    %50 = vector.shape_cast %49 : vector<1x1x128xf32> to vector<1x128xf32>
    %51 = vector.broadcast %50 : vector<1x128xf32> to vector<256x128xf32>
    %52 = arith.addf %48, %51 : vector<256x128xf32>
    %53 = vector.extract_strided_slice %52 {offsets = [0, 0], sizes = [256, 32], strides = [1, 1]} : vector<256x128xf32> to vector<256x32xf32>
    %c0_27 = arith.constant 0 : index
    %c0_28 = arith.constant 0 : index
    %54 = vector.load %arg6[%c0_27, %c0_28] : memref<256x32xf32, #tpu.memory_space<vmem>>, vector<256x32xf32>
    tpu.vector_store %arg6[%c0_27, %c0_28], %53 {strides = array<i32>} : memref<256x32xf32, #tpu.memory_space<vmem>>, vector<256x32xf32>,
    return
  }
  func.func @transform_0(%arg0: i32) -> (i32, i32) {
    %c0_i32 = arith.constant 0 : i32
    %c0_i32_0 = arith.constant 0 : i32
    return %arg0, %c0_i32 : i32, i32
  }
  func.func @transform_1(%arg0: i32) -> (i32, i32, i32) {
    %c0_i32 = arith.constant 0 : i32
    %c0_i32_0 = arith.constant 0 : i32
    %c0_i32_1 = arith.constant 0 : i32
    %c0_i32_2 = arith.constant 0 : i32
    return %c0_i32, %c0_i32_0, %c0_i32_1 : i32, i32, i32
  }
  func.func @transform_2(%arg0: i32) -> (i32, i32, i32) {
    %c0_i32 = arith.constant 0 : i32
    %c0_i32_0 = arith.constant 0 : i32
    %c0_i32_1 = arith.constant 0 : i32
    %c0_i32_2 = arith.constant 0 : i32
    return %c0_i32, %c0_i32_0, %c0_i32_1 : i32, i32, i32
  }
  func.func @transform_3(%arg0: i32) -> (i32, i32, i32) {
    %c0_i32 = arith.constant 0 : i32
    %c0_i32_0 = arith.constant 0 : i32
    %c0_i32_1 = arith.constant 0 : i32
    %c0_i32_2 = arith.constant 0 : i32
    return %c0_i32, %c0_i32_0, %c0_i32_1 : i32, i32, i32
  }
  func.func @transform_4(%arg0: i32) -> (i32, i32, i32) {
    %c0_i32 = arith.constant 0 : i32
    %c0_i32_0 = arith.constant 0 : i32
    %c0_i32_1 = arith.constant 0 : i32
    %c0_i32_2 = arith.constant 0 : i32
    return %c0_i32, %c0_i32_0, %c0_i32_1 : i32, i32, i32
  }
  func.func @transform_5(%arg0: i32) -> (i32, i32) {
    %c0_i32 = arith.constant 0 : i32
    %c0_i32_0 = arith.constant 0 : i32
    return %arg0, %c0_i32 : i32, i32
  }
}

</mosaic_0001>

<bundles_post_ra>
// kernel: tpu_custom_call.1
= control target key start
LH: loop header
LB: loop body
LE: loop exit
PB: predicated region body
PF: predicated region fallthrough
CT: control target
= control target key end

     0   :  { %s2494_s18 = smov 0   ;;  %s2496_s19 = smov 0   ;;  %s3510_s0 = inlined_call_operand.vmem [shape: f32[1000,32], index: 0, kind: input, shape index: {}]   ;;  %s3511_s1 = inlined_call_operand.vmem [shape: bf16[2,128,128], index: 1, kind: input, shape index: {}]   ;;  %s3512_s2 = inlined_call_operand.vmem [shape: f32[2,1,128], index: 2, kind: input, shape index: {}]   ;;  %s3513_s3 = inlined_call_operand.vmem [shape: f32[1,1,128], index: 3, kind: input, shape index: {}]   ;;  %s3514_s4 = inlined_call_operand.vmem [shape: f32[1,1,128], index: 4, kind: input, shape index: {}]   ;;  %s3515_s5 = inlined_call_operand.vmem [shape: f32[1000,32], index: 5, kind: output, shape index: {}]  }
   0x1   :  { %s2498_s20 = smov 0  }
   0x2 LB: > { %s2507_s21 = sadd.s32 4294967295, %s2430_s20   ;;  %s2509_s22 = sadd.s32 1, %s2430_s20   ;;  %s2430_s20 = sphi %s2498_s20, %s3547_s20   ;;  %s2426_s19 = sphi %s2496_s19, %s3546_s19   ;;  %s2422_s18 = sphi %s2494_s18, %s3545_s18  }
   0x3   : > { %s129_s23 = ssub.s32 %s2430_s20, %s2509_s22  ;;  %s132_s24 = sadd.s32 1, %s2426_s19 }
   0x4   : > { %p130_p0 = scmp.eq.s32.totalorder %s129_s23, 0  ;;  %p142_p1 = scmp.ne.s32.totalorder %s2426_s19, %s2422_s18 }
   0x5   : > { %p143_p2 = scmp.eq.s32.totalorder %s2507_s21, 3  ;;  %p1871_p3 = scmp.ge.s32.totalorder %s2430_s20, 1 }
   0x6   : > { %s2517_s25 = scalar_select %p130_p0, %s2426_s19, %s132_s24  }
   0x7   : > { %p2519_p4 = por %p143_p2, %p142_p1  ;;  %p196_p5 = scmp.lt.s32.totalorder %s2430_s20, 5 }
   0x9   : > { %p197_p6 = pnand %p1871_p3, %p196_p5 }
   0xb   : > { %200 = sbr.rel (%p197_p6) target bundleno = 808 (0x328), region = 40 }
  0x10   : > { %v2172_v0 = vld [vmem:[%s3511_s1 + $0x8] sm:$0xff]   ;;  %s2527_s29 = sshll.u32 %s2507_s21, 5  ;;  %v2173_v1 = vld [vmem:[%s3511_s1] sm:$0xff]   ;;  %vm318_vm0 = vcmask 261120   ;;  %s224_s24 = sand.u32 1, %s2422_s18  }
  0x11   : > { %p232_p7 = scmp.lt.s32.totalorder %s2527_s29, 124  ;;  %1984 = vmatprep.subr.bf16.mxu0 %v2172_v0  ;;  %v2590_v50 = vld [vmem:[%s3512_s2] ss:$0 sm:$0xff]  ;;  %s1872_s27 = sshll.u32 %s224_s24, 8 }
  0x12   : > { %1985 = vmatpush3.bf16.msra.mxu0 %v2172_v0  ;;  %s3274_s6 = scalar_lea.vmem [#allocation2], %s1872_s27   ;;  %s1536_s18 = ssub.s32 (%p2519_p4), 125, %s2527_s29 }
  0x13   : > { %s233_s7 = scalar_select %p232_p7, %s2527_s29, 124  ;;  %1986 = vmatprep.subr.bf16.mxu0 %v2173_v1 }
  0x14   : > { %p1537_p8 = scmp.lt.s32.totalorder (%p2519_p4), %s1536_s18, 32 }
  0x15   : > { %s1874_s8 = sshll.u32 %s233_s7, 3  ;;  %s1939_s7 = sshll.u32 (%p2519_p4), %s2507_s21, 8 }
  0x16   : > { %s2537_s11 = scalar_lea.vmem %s3510_s0, %s1874_s8  ;;  %1987 = vmatpush3.bf16.msra.mxu0 %v2173_v1  ;;  %s3378_s10 = scalar_lea.vmem (%p2519_p4), %s3515_s5, %s1939_s7  }
  0x17   : > { %v247_v2 = vld [vmem:[%s2537_s11] sm:$0xff]  ;;  %v248_v3 = vld [vmem:[%s2537_s11 + $0x8] sm:$0xff]  ;;  %v249_v4 = vld [vmem:[%s2537_s11 + $0x10] sm:$0xff] }
  0x18   : > { %v283_v5 = vpack.c.bf16 %v248_v3, %v247_v2  ;;  %v250_v6 = vld [vmem:[%s2537_s11 + $0x18] sm:$0xff]  ;;  %v251_v7 = vld [vmem:[%s2537_s11 + $0x20] sm:$0xff]  ;;  %v252_v8 = vld [vmem:[%s2537_s11 + $0x28] sm:$0xff] }
  0x19   : > { %v284_v9 = vpack.c.bf16 %v250_v6, %v249_v4  ;;  %v285_v10 = vpack.c.bf16 %v252_v8, %v251_v7  ;;  %v253_v11 = vld [vmem:[%s2537_s11 + $0x30] sm:$0xff]  ;;  %v254_v12 = vld [vmem:[%s2537_s11 + $0x38] sm:$0xff]  ;;  %v255_v13 = vld [vmem:[%s2537_s11 + $0x40] sm:$0xff] }
  0x1a   : > { %1988 = vmatprep.mubr.msk.bf16.mxu0 %vm318_vm0, %v283_v5  ;;  %v256_v14 = vld [vmem:[%s2537_s11 + $0x48] sm:$0xff]  ;;  %v286_v15 = vpack.c.bf16 %v254_v12, %v253_v11  ;;  %v257_v17 = vld [vmem:[%s2537_s11 + $0x50] sm:$0xff]  ;;  %v258_v18 = vld [vmem:[%s2537_s11 + $0x58] sm:$0xff] }
  0x1b   : > { %1989 = vmatmul.mubr.msk.bf16.vlgmr.msra.gmra.mxu0 %vm318_vm0, %v284_v9  ;;  %v287_v16 = vpack.c.bf16 %v256_v14, %v255_v13  ;;  %v259_v19 = vld [vmem:[%s2537_s11 + $0x60] sm:$0xff]  ;;  %v260_v20 = vld [vmem:[%s2537_s11 + $0x68] sm:$0xff]  ;;  %v288_v21 = vpack.c.bf16 %v258_v18, %v257_v17  ;;  %v261_v23 = vld [vmem:[%s2537_s11 + $0x70] sm:$0xff] }
  0x1c   : > { %1992 = vmatprep.mubr.msk.bf16.mxu0 %vm318_vm0, %v285_v10  ;;  %v289_v22 = vpack.c.bf16 %v260_v20, %v259_v19  ;;  %v262_v24 = vld [vmem:[%s2537_s11 + $0x78] sm:$0xff]  ;;  %v263_v25 = vld [vmem:[%s2537_s11 + $0x80] sm:$0xff]  ;;  %v264_v26 = vld [vmem:[%s2537_s11 + $0x88] sm:$0xff] }
  0x1d   : > { %v290_v27 = vpack.c.bf16 %v262_v24, %v261_v23  ;;  %v291_v28 = vpack.c.bf16 %v264_v26, %v263_v25  ;;  %v265_v29 = vld [vmem:[%s2537_s11 + $0x90] sm:$0xff]  ;;  %v266_v30 = vld [vmem:[%s2537_s11 + $0x98] sm:$0xff]  ;;  %v267_v31 = vld [vmem:[%s2537_s11 + $0xa0] sm:$0xff] }
  0x1e   : > { %v268_v32 = vld [vmem:[%s2537_s11 + $0xa8] sm:$0xff]  ;;  %v292_v33 = vpack.c.bf16 %v266_v30, %v265_v29  ;;  %v269_v35 = vld [vmem:[%s2537_s11 + $0xb0] sm:$0xff]  ;;  %v270_v36 = vld [vmem:[%s2537_s11 + $0xb8] sm:$0xff] }
  0x1f   : > { %v293_v34 = vpack.c.bf16 %v268_v32, %v267_v31  ;;  %v271_v37 = vld [vmem:[%s2537_s11 + $0xc0] sm:$0xff]  ;;  %v272_v38 = vld [vmem:[%s2537_s11 + $0xc8] sm:$0xff]  ;;  %v294_v39 = vpack.c.bf16 %v270_v36, %v269_v35  ;;  %v273_v41 = vld [vmem:[%s2537_s11 + $0xd0] sm:$0xff] }
  0x20   : > { %v295_v40 = vpack.c.bf16 %v272_v38, %v271_v37  ;;  %v274_v42 = vld [vmem:[%s2537_s11 + $0xd8] sm:$0xff]  ;;  %v275_v43 = vld [vmem:[%s2537_s11 + $0xe0] sm:$0xff]  ;;  %v276_v44 = vld [vmem:[%s2537_s11 + $0xe8] sm:$0xff] }
  0x21   : > { %v296_v45 = vpack.c.bf16 %v274_v42, %v273_v41  ;;  %v297_v46 = vpack.c.bf16 %v276_v44, %v275_v43  ;;  %v277_v47 = vld [vmem:[%s2537_s11 + $0xf0] sm:$0xff]  ;;  %v278_v48 = vld [vmem:[%s2537_s11 + $0xf8] sm:$0xff] }
  0x22   : > { %v298_v49 = vpack.c.bf16 %v278_v48, %v277_v47  ;;  %v2175_v43 = vld [vmem:[%s3511_s1 + $0x70] sm:$0xff]   ;;  %v2176_v47 = vld [vmem:[%s3511_s1 + $0x68] sm:$0xff]  }
  0x23   : > { %1993 = vmatmul.mubr.msk.bf16.gmra.mxu0 %vm318_vm0, %v286_v15 }
  0x24   : > { %1996 = vmatprep.mubr.msk.bf16.mxu0 %vm318_vm0, %v287_v16 }
  0x2b   : > { %1997 = vmatmul.mubr.msk.bf16.gmra.mxu0 %vm318_vm0, %v288_v21 }
  0x2c   : > { %2000 = vmatprep.mubr.msk.bf16.mxu0 %vm318_vm0, %v289_v22 }
  0x33   : > { %2001 = vmatmul.mubr.msk.bf16.gmra.mxu0 %vm318_vm0, %v290_v27 }
  0x34   : > { %2004 = vmatprep.mubr.msk.bf16.mxu0 %vm318_vm0, %v291_v28 }
  0x3b   : > { %2005 = vmatmul.mubr.msk.bf16.gmra.mxu0 %vm318_vm0, %v292_v33 }
  0x3c   : > { %2008 = vmatprep.mubr.msk.bf16.mxu0 %vm318_vm0, %v293_v34 }
  0x43   : > { %2009 = vmatmul.mubr.msk.bf16.gmra.mxu0 %vm318_vm0, %v294_v39  ;;  %v2174_v39 = vld [vmem:[%s3511_s1 + $0x78] sm:$0xff]  }
  0x44   : > { %2012 = vmatprep.mubr.msk.bf16.mxu0 %vm318_vm0, %v295_v40  ;;  %2020 = vmatprep.subr.bf16.mxu0 %v2174_v39 }
  0x45   : > { %2068 = vmatprep.subr.bf16.mxu1 %v2174_v39  ;;  %2021 = vmatpush3.bf16.msra.mxu0 %v2174_v39 }
  0x46   : > { %2076 = vmatpush3.bf16.msra.mxu1 %v2174_v39  ;;  %2022 = vmatprep.subr.bf16.mxu0 %v2175_v43 }
  0x47   : > { %2069 = vmatprep.subr.bf16.mxu1 %v2175_v43 }
  0x49   : > { %2023 = vmatpush3.bf16.msra.mxu0 %v2175_v43 }
  0x4a   : > { %2077 = vmatpush3.bf16.msra.mxu1 %v2175_v43  ;;  %2024 = vmatprep.subr.bf16.mxu0 %v2176_v47 }
  0x4b   : > { %2013 = vmatmul.mubr.msk.bf16.gmra.mxu0 %vm318_vm0, %v296_v45  ;;  %2070 = vmatprep.subr.bf16.mxu1 %v2176_v47 }
  0x4c   : > { %2016 = vmatprep.mubr.msk.bf16.mxu0 %vm318_vm0, %v297_v46 }
  0x4d   : > { %2025 = vmatpush3.bf16.msra.mxu0 %v2176_v47 }
  0x4e   : > { %2078 = vmatpush3.bf16.msra.mxu1 %v2176_v47 }
  0x53   : > { %2017 = vmatmul.mubr.msk.bf16.gmra.mxu0 %vm318_vm0, %v298_v49 }
  0xdb   : > { %v1990_v51 = vpop.f32.mrf.mxu0 }
  0xdc   : > { %v2593_v52 = vadd.f32 %v1990_v51, %v2590_v50 }
  0xdd   : > { %v401_v53 = vpop.f32.mrf.mxu0 }
  0xde   : > { %532 = vadd.xlane.f32.xlu0 %v2593_v52  ;;  %v2597_v55 = vadd.f32 %v2590_v50, %v401_v53  ;;  %v626_v59 = vmul.f32 %v2593_v52, %v2593_v52 }
  0xdf   : > { %v1991_v54 = vpop.f32.mrf.mxu0 }
  0xe0   : > { %v2600_v56 = vadd.f32 %v1991_v54, %v2590_v50  ;;  %v624_v62 = vmul.f32 %v2597_v55, %v2597_v55  ;;  %v2177_v54 = vld [vmem:[%s3511_s1 + $0x60] sm:$0xff]  }
  0xe1   : > { %v404_v57 = vpop.f32.mrf.mxu0  ;;  %2026 = vmatprep.subr.bf16.mxu0 %v2177_v54  ;;  %2071 = vmatprep.subr.bf16.mxu1 %v2177_v54 }
  0xe2   : > { %534 = vadd.xlane.f32.xlu1 %v2600_v56  ;;  %528 = vadd.xlane.f32.xlu0 %v2597_v55  ;;  %v2605_v58 = vadd.f32 %v2590_v50, %v404_v57  ;;  %v627_v61 = vmul.f32 %v2600_v56, %v2600_v56 }
  0xe3   : > { %v1994_v60 = vpop.f32.mrf.mxu0  ;;  %2027 = vmatpush3.bf16.msra.mxu0 %v2177_v54  ;;  %2079 = vmatpush3.bf16.msra.mxu1 %v2177_v54 }
  0xe4   : > { %v2615_v0 = vadd.f32 %v1994_v60, %v2590_v50  ;;  %v625_v3 = vmul.f32 %v2605_v58, %v2605_v58  ;;  %v2178_v60 = vld [vmem:[%s3511_s1 + $0x58] sm:$0xff]  }
  0xe5   : > { %v417_v63 = vpop.f32.mrf.mxu0  ;;  %2028 = vmatprep.subr.bf16.mxu0 %v2178_v60  ;;  %2072 = vmatprep.subr.bf16.mxu1 %v2178_v60 }
  0xe6   : > { %530 = vadd.xlane.f32.xlu1 %v2605_v58  ;;  %660 = vadd.xlane.f32.xlu0 %v626_v59  ;;  %v2618_v1 = vadd.f32 %v2590_v50, %v417_v63  ;;  %v630_v4 = vmul.f32 %v2615_v0, %v2615_v0 }
  0xe7   : > { %v1995_v2 = vpop.f32.mrf.mxu0  ;;  %2029 = vmatpush3.bf16.msra.mxu0 %v2178_v60  ;;  %2080 = vmatpush3.bf16.msra.mxu1 %v2178_v60 }
  0xe8   : > { %v2627_v6 = vadd.f32 %v1995_v2, %v2590_v50  ;;  %v628_v7 = vmul.f32 %v2618_v1, %v2618_v1  ;;  %v2179_v2 = vld [vmem:[%s3511_s1 + $0x50] sm:$0xff]  }
  0xe9   : > { %v420_v5 = vpop.f32.mrf.mxu0  ;;  %2030 = vmatprep.subr.bf16.mxu0 %v2179_v2  ;;  %2073 = vmatprep.subr.bf16.mxu1 %v2179_v2 }
  0xea   : > { %662 = vadd.xlane.f32.xlu1 %v627_v61  ;;  %656 = vadd.xlane.f32.xlu0 %v624_v62  ;;  %v2633_v9 = vadd.f32 %v2590_v50, %v420_v5  ;;  %v631_v10 = vmul.f32 %v2627_v6, %v2627_v6 }
  0xeb   : > { %v1998_v8 = vpop.f32.mrf.mxu0  ;;  %2031 = vmatpush3.bf16.msra.mxu0 %v2179_v2  ;;  %2081 = vmatpush3.bf16.msra.mxu1 %v2179_v2 }
  0xec   : > { %v2638_v12 = vadd.f32 %v1998_v8, %v2590_v50  ;;  %v629_v13 = vmul.f32 %v2633_v9, %v2633_v9 }
  0xed   : > { %v433_v11 = vpop.f32.mrf.mxu0 }
  0xee   : > { %540 = vadd.xlane.f32.xlu1 %v2615_v0  ;;  %536 = vadd.xlane.f32.xlu0 %v2618_v1  ;;  %v2645_v15 = vadd.f32 %v2590_v50, %v433_v11  ;;  %v634_v19 = vmul.f32 %v2638_v12, %v2638_v12 }
  0xef   : > { %v1999_v14 = vpop.f32.mrf.mxu0 }
  0xf0   : > { %v2648_v16 = vadd.f32 %v1999_v14, %v2590_v50  ;;  %v632_v22 = vmul.f32 %v2645_v15, %v2645_v15  ;;  %v2181_v14 = vld [vmem:[%s3511_s1 + $0x40] sm:$0xff]  }
  0xf1   : > { %v436_v17 = vpop.f32.mrf.mxu0 }
  0xf2   : > { %658 = vadd.xlane.f32.xlu1 %v625_v3  ;;  %668 = vadd.xlane.f32.xlu0 %v630_v4  ;;  %v2653_v18 = vadd.f32 %v2590_v50, %v436_v17  ;;  %v635_v21 = vmul.f32 %v2648_v16, %v2648_v16 }
  0xf3   : > { %v2002_v20 = vpop.f32.mrf.mxu0 }
  0xf4   : > { %v2663_v24 = vadd.f32 %v2002_v20, %v2590_v50  ;;  %v633_v25 = vmul.f32 %v2653_v18, %v2653_v18 }
  0xf5   : > { %v449_v23 = vpop.f32.mrf.mxu0 }
  0xf6   : > { %542 = vadd.xlane.f32.xlu1 %v2627_v6  ;;  %664 = vadd.xlane.f32.xlu0 %v628_v7  ;;  %v2669_v27 = vadd.f32 %v2590_v50, %v449_v23  ;;  %v638_v31 = vmul.f32 %v2663_v24, %v2663_v24  ;;  %v2180_v7 = vld [vmem:[%s3511_s1 + $0x48] sm:$0xff]  }
  0xf7   : > { %v2003_v26 = vpop.f32.mrf.mxu0  ;;  %2032 = vmatprep.subr.bf16.mxu0 %v2180_v7  ;;  %2074 = vmatprep.subr.bf16.mxu1 %v2180_v7 }
  0xf8   : > { %v2672_v28 = vadd.f32 %v2003_v26, %v2590_v50  ;;  %v636_v34 = vmul.f32 %v2669_v27, %v2669_v27  ;;  %2033 = vmatpush3.bf16.msra.mxu0 %v2180_v7  ;;  %2082 = vmatpush3.bf16.msra.mxu1 %v2180_v7 }
  0xf9   : > { %v452_v29 = vpop.f32.mrf.mxu0  ;;  %2034 = vmatprep.subr.bf16.mxu0 %v2181_v14  ;;  %2075 = vmatprep.subr.bf16.mxu1 %v2181_v14 }
  0xfa   : > { %670 = vadd.xlane.f32.xlu1 %v631_v10  ;;  %538 = vadd.xlane.f32.xlu0 %v2633_v9  ;;  %v2677_v30 = vadd.f32 %v2590_v50, %v452_v29  ;;  %v639_v33 = vmul.f32 %v2672_v28, %v2672_v28 }
  0xfb   : > { %v2006_v32 = vpop.f32.mrf.mxu0 }
  0xfc   : > { %v2687_v36 = vadd.f32 %v2006_v32, %v2590_v50  ;;  %v637_v37 = vmul.f32 %v2677_v30, %v2677_v30  ;;  %2035 = vmatpush3.bf16.msra.mxu0 %v2181_v14  ;;  %2083 = vmatpush3.bf16.msra.mxu1 %v2181_v14 }
  0xfd   : > { %v465_v35 = vpop.f32.mrf.mxu0 }
  0xfe   : > { %666 = vadd.xlane.f32.xlu1 %v629_v13  ;;  %548 = vadd.xlane.f32.xlu0 %v2638_v12  ;;  %v2696_v40 = vadd.f32 %v2590_v50, %v465_v35  ;;  %v642_v45 = vmul.f32 %v2687_v36, %v2687_v36 }
  0xff   : > { %v2007_v38 = vpop.f32.mrf.mxu0 }
 0x100   : > { %v2699_v41 = vadd.f32 %v2007_v38, %v2590_v50  ;;  %v640_v49 = vmul.f32 %v2696_v40, %v2696_v40 }
 0x101   : > { %v468_v42 = vpop.f32.mrf.mxu0 }
 0x102   : > { %550 = vadd.xlane.f32.xlu1 %v2648_v16  ;;  %544 = vadd.xlane.f32.xlu0 %v2645_v15  ;;  %v2707_v44 = vadd.f32 %v2590_v50, %v468_v42  ;;  %v643_v48 = vmul.f32 %v2699_v41, %v2699_v41 }
 0x103   : > { %v2010_v46 = vpop.f32.mrf.mxu0 }
 0x104   : > { %v2720_v53 = vadd.f32 %v2010_v46, %v2590_v50  ;;  %v641_v57 = vmul.f32 %v2707_v44, %v2707_v44 }
 0x105   : > { %v481_v51 = vpop.f32.mrf.mxu0 }
 0x106   : > { %546 = vadd.xlane.f32.xlu1 %v2653_v18  ;;  %676 = vadd.xlane.f32.xlu0 %v634_v19  ;;  %v2732_v61 = vadd.f32 %v2590_v50, %v481_v51  ;;  %v646_v4 = vmul.f32 %v2720_v53, %v2720_v53 }
 0x107   : > { %v2011_v59 = vpop.f32.mrf.mxu0 }
 0x108   : > { %v2735_v62 = vadd.f32 %v2011_v59, %v2590_v50  ;;  %v644_v10 = vmul.f32 %v2732_v61, %v2732_v61 }
 0x109   : > { %v484_v63 = vpop.f32.mrf.mxu0 }
 0x10a   : > { %678 = vadd.xlane.f32.xlu1 %v635_v21  ;;  %672 = vadd.xlane.f32.xlu0 %v632_v22  ;;  %v2743_v3 = vadd.f32 %v2590_v50, %v484_v63  ;;  %v647_v8 = vmul.f32 %v2735_v62, %v2735_v62 }
 0x10b   : > { %v2014_v5 = vpop.f32.mrf.mxu0 }
 0x10c   : > { %v2756_v13 = vadd.f32 %v2014_v5, %v2590_v50  ;;  %v645_v17 = vmul.f32 %v2743_v3, %v2743_v3 }
 0x10d   : > { %v497_v11 = vpop.f32.mrf.mxu0 }
 0x10e   : > { %674 = vadd.xlane.f32.xlu1 %v633_v25  ;;  %556 = vadd.xlane.f32.xlu0 %v2663_v24  ;;  %v2765_v20 = vadd.f32 %v2590_v50, %v497_v11  ;;  %v650_v25 = vmul.f32 %v2756_v13, %v2756_v13 }
 0x10f   : > { %v2015_v19 = vpop.f32.mrf.mxu0 }
 0x110   : > { %v2768_v21 = vadd.f32 %v2015_v19, %v2590_v50 }
 0x111   : > { %v500_v22 = vpop.f32.mrf.mxu0 }
 0x112   : > { %558 = vadd.xlane.f32.xlu1 %v2672_v28  ;;  %552 = vadd.xlane.f32.xlu0 %v2669_v27  ;;  %v2773_v23 = vadd.f32 %v2590_v50, %v500_v22  ;;  %v651_v29 = vmul.f32 %v2768_v21, %v2768_v21 }
 0x113   : > { %v2018_v26 = vpop.f32.mrf.mxu0 }
 0x115   : > { %v513_v32 = vpop.f32.mrf.mxu0 }
 0x116   : > { %554 = vadd.xlane.f32.xlu1 %v2677_v30  ;;  %684 = vadd.xlane.f32.xlu0 %v638_v31  ;;  %v648_v31 = vmul.f32 %v2765_v20, %v2765_v20 }
 0x117   : > { %v2019_v35 = vpop.f32.mrf.mxu0 }
 0x118   : > { %v2792_v38 = vadd.f32 %v2019_v35, %v2590_v50 }
 0x119   : > { %v516_v39 = vpop.f32.mrf.mxu0 }
 0x11a   : > { %686 = vadd.xlane.f32.xlu1 %v639_v33  ;;  %680 = vadd.xlane.f32.xlu0 %v636_v34  ;;  %v2783_v33 = vadd.f32 %v2018_v26, %v2590_v50  ;;  %v649_v34 = vmul.f32 %v2773_v23, %v2773_v23  ;;  %3525 = vst [vmem:[#allocation5_spill] sm:$0xff] %v2792_v38 }
 0x11b   : > { %v2797_v42 = vadd.f32 %v2590_v50, %v516_v39  ;;  %v655_v47 = vmul.f32 %v2792_v38, %v2792_v38 }
 0x11c   : > { %3523 = vst [vmem:[#allocation3_spill] sm:$0xff] %v2783_v33  ;;  %v654_v46 = vmul.f32 %v2783_v33, %v2783_v33 }
 0x11d   : > { %3526 = vst [vmem:[#allocation6_spill] sm:$0xff] %v2797_v42 }
 0x11e   : > { %682 = vadd.xlane.f32.xlu1 %v637_v37  ;;  %564 = vadd.xlane.f32.xlu0 %v2687_v36  ;;  %v2789_v37 = vadd.f32 %v2590_v50, %v513_v32 }
 0x120   : > { %3524 = vst [vmem:[#allocation4_spill] sm:$0xff] %v2789_v37  ;;  %v652_v43 = vmul.f32 %v2789_v37, %v2789_v37 }
 0x122   : > { %566 = vadd.xlane.f32.xlu1 %v2699_v41  ;;  %560 = vadd.xlane.f32.xlu0 %v2696_v40 }
 0x126   : > { %562 = vadd.xlane.f32.xlu1 %v2707_v44  ;;  %692 = vadd.xlane.f32.xlu0 %v642_v45  ;;  %v653_v45 = vmul.f32 %v2797_v42, %v2797_v42 }
 0x12a   : > { %694 = vadd.xlane.f32.xlu1 %v643_v48  ;;  %688 = vadd.xlane.f32.xlu0 %v640_v49 }
 0x12e   : > { %690 = vadd.xlane.f32.xlu1 %v641_v57  ;;  %572 = vadd.xlane.f32.xlu0 %v2720_v53 }
 0x132   : > { %574 = vadd.xlane.f32.xlu1 %v2735_v62  ;;  %568 = vadd.xlane.f32.xlu0 %v2732_v61 }
 0x136   : > { %570 = vadd.xlane.f32.xlu1 %v2743_v3  ;;  %700 = vadd.xlane.f32.xlu0 %v646_v4 }
 0x13a   : > { %702 = vadd.xlane.f32.xlu1 %v647_v8  ;;  %696 = vadd.xlane.f32.xlu0 %v644_v10 }
 0x13e   : > { %698 = vadd.xlane.f32.xlu1 %v645_v17  ;;  %580 = vadd.xlane.f32.xlu0 %v2756_v13 }
 0x142   : > { %582 = vadd.xlane.f32.xlu1 %v2768_v21  ;;  %576 = vadd.xlane.f32.xlu0 %v2765_v20 }
 0x146   : > { %578 = vadd.xlane.f32.xlu1 %v2773_v23  ;;  %708 = vadd.xlane.f32.xlu0 %v650_v25 }
 0x14a   : > { %710 = vadd.xlane.f32.xlu1 %v651_v29  ;;  %704 = vadd.xlane.f32.xlu0 %v648_v31 }
 0x14e   : > { %706 = vadd.xlane.f32.xlu1 %v649_v34  ;;  %588 = vadd.xlane.f32.xlu0 %v2783_v33 }
 0x152   : > { %590 = vadd.xlane.f32.xlu1 %v2792_v38  ;;  %584 = vadd.xlane.f32.xlu0 %v2789_v37 }
 0x156   : > { %586 = vadd.xlane.f32.xlu1 %v2797_v42  ;;  %712 = vadd.xlane.f32.xlu0 %v652_v43 }
 0x15a   : > { %714 = vadd.xlane.f32.xlu1 %v653_v45  ;;  %716 = vadd.xlane.f32.xlu0 %v654_v46 }
 0x15e   : > { %718 = vadd.xlane.f32.xlu1 %v655_v47 }
 0x167   : > { %v533_v50 = vpop.xlane.xlu0 %532 }
 0x168   : > { %v594_v51 = vmul.f32 0.015625, %v533_v50 }
 0x16a   : > { %v754_v60 = vmul.f32 %v594_v51, %v594_v51 }
 0x16b   : > { %v535_v48 = vpop.xlane.xlu1 %534  ;;  %v529_v49 = vpop.xlane.xlu0 %528 }
 0x16c   : > { %v2808_v54 = vmul.f32 0.015625, %v535_v48  ;;  %v2810_v63 = vmul.f32 0.015625, %v529_v49 }
 0x16e   : > { %v755_v5 = vmul.f32 %v2808_v54, %v2808_v54  ;;  %v752_v10 = vmul.f32 %v2810_v63, %v2810_v63 }
 0x16f   : > { %v531_v57 = vpop.xlane.xlu1 %530  ;;  %v661_v59 = vpop.xlane.xlu0 %660 }
 0x170   : > { %v722_v2 = vmul.f32 0.015625, %v661_v59  ;;  %v2816_v26 = vmul.f32 0.015625, %v531_v57 }
 0x172   : > { %v786_v4 = vsub.f32 %v722_v2, %v754_v60  ;;  %v753_v45 = vmul.f32 %v2816_v26, %v2816_v26 }
 0x173   : > { %v663_v7 = vpop.xlane.xlu1 %662  ;;  %v657_v8 = vpop.xlane.xlu0 %656 }
 0x174   : > { %v818_v11 = vmax.f32 %v786_v4, 0.0  ;;  %v723_v14 = vmul.f32 0.015625, %v663_v7  ;;  %v720_v17 = vmul.f32 0.015625, %v657_v8 }
 0x176   : > { %v882_v19 = vadd.f32 1e-05, %v818_v11  ;;  %v787_v22 = vsub.f32 %v723_v14, %v755_v5  ;;  %v784_v25 = vsub.f32 %v720_v17, %v752_v10 }
 0x177   : > { %v541_v29 = vpop.xlane.xlu1 %540  ;;  %v537_v31 = vpop.xlane.xlu0 %536 }
 0x178   : > { %2182 = vrsqrt.f32 %v882_v19  ;;  %v819_v32 = vmax.f32 %v787_v22, 0.0  ;;  %v816_v34 = vmax.f32 %v784_v25, 0.0  ;;  %v2818_v35 = vmul.f32 0.015625, %v541_v29 }
 0x179   : > { %v2824_v57 = vmul.f32 0.015625, %v537_v31  ;;  %v850_v19 = vsub.f32 %v2593_v52, %v594_v51  ;;  %v851_v51 = vsub.f32 %v2600_v56, %v2808_v54 }
 0x17a   : > { %v883_v39 = vadd.f32 1e-05, %v819_v32  ;;  %v880_v43 = vadd.f32 1e-05, %v816_v34  ;;  %v758_v50 = vmul.f32 %v2818_v35, %v2818_v35 }
 0x17b   : > { %v659_v46 = vpop.xlane.xlu1 %658  ;;  %v669_v47 = vpop.xlane.xlu0 %668  ;;  %v756_v11 = vmul.f32 %v2824_v57, %v2824_v57 }
 0x17c   : > { %2184 = vrsqrt.f32 %v883_v39  ;;  %v721_v48 = vmul.f32 0.015625, %v659_v46  ;;  %v726_v49 = vmul.f32 0.015625, %v669_v47 }
 0x17d   : > { %2186 = vrsqrt.f32 %v880_v43 }
 0x17e   : > { %v785_v59 = vsub.f32 %v721_v48, %v753_v45  ;;  %v790_v60 = vsub.f32 %v726_v49, %v758_v50  ;;  %v2838_v45 = vld [vmem:[%s3513_s3] ss:$0 sm:$0xff] }
 0x17f   : > { %v543_v2 = vpop.xlane.xlu1 %542  ;;  %v665_v4 = vpop.xlane.xlu0 %664 }
 0x180   : > { %v817_v5 = vmax.f32 %v785_v59, 0.0  ;;  %v822_v7 = vmax.f32 %v790_v60, 0.0  ;;  %v2826_v8 = vmul.f32 0.015625, %v543_v2  ;;  %v724_v10 = vmul.f32 0.015625, %v665_v4  ;;  %v2847_v2 = vld [vmem:[%s3514_s4] ss:$0 sm:$0xff] }
 0x182   : > { %v881_v14 = vadd.f32 1e-05, %v817_v5  ;;  %v886_v17 = vadd.f32 1e-05, %v822_v7  ;;  %v788_v22 = vsub.f32 %v724_v10, %v756_v11  ;;  %v759_v31 = vmul.f32 %v2826_v8, %v2826_v8 }
 0x183   : > { %v671_v25 = vpop.xlane.xlu1 %670  ;;  %v539_v29 = vpop.xlane.xlu0 %538  ;;  %v848_v7 = vsub.f32 %v2597_v55, %v2810_v63 }
 0x184   : > { %2188 = vrsqrt.f32 %v881_v14  ;;  %v727_v32 = vmul.f32 0.015625, %v671_v25  ;;  %v2833_v34 = vmul.f32 0.015625, %v539_v29  ;;  %v820_v43 = vmax.f32 %v788_v22, 0.0 }
 0x185   : > { %v2183_v39 = vpop.eup %2182  ;;  %2190 = vrsqrt.f32 %v886_v17 }
 0x186   : > { %v946_v46 = vmul.f32 %v2183_v39, %v850_v19  ;;  %v791_v52 = vsub.f32 %v727_v32, %v759_v31  ;;  %v884_v47 = vadd.f32 1e-05, %v820_v43  ;;  %v757_v59 = vmul.f32 %v2833_v34, %v2833_v34 }
 0x187   : > { %v667_v50 = vpop.xlane.xlu1 %666  ;;  %v549_v48 = vpop.xlane.xlu0 %548 }
 0x188   : > { %v823_v49 = vmax.f32 %v791_v52, 0.0  ;;  %v725_v60 = vmul.f32 0.015625, %v667_v50  ;;  %v985_v4 = vmul.f32 %v2838_v45, %v946_v46  ;;  %2192 = vrsqrt.f32 %v884_v47 }
 0x189   : > { %v2185_v5 = vpop.eup %2184  ;;  %v2855_v29 = vmul.f32 0.015625, %v549_v48  ;;  %v849_v48 = vsub.f32 %v2605_v58, %v2816_v26 }
 0x18a   : > { %v2187_v56 = vpop.eup %2186  ;;  %v947_v54 = vmul.f32 %v2185_v5, %v851_v51  ;;  %v887_v10 = vadd.f32 1e-05, %v823_v49  ;;  %v789_v11 = vsub.f32 %v725_v60, %v757_v59  ;;  %v2853_v22 = vadd.f32 %v2847_v2, %v985_v4 }
 0x18b   : > { %v551_v14 = vpop.xlane.xlu1 %550  ;;  %v545_v17 = vpop.xlane.xlu0 %544  ;;  %v944_v19 = vmul.f32 %v2187_v56, %v848_v7  ;;  %v762_v49 = vmul.f32 %v2855_v29, %v2855_v29  ;;  %v854_v4 = vsub.f32 %v2615_v0, %v2818_v35 }
 0x18c   : > { %2194 = vrsqrt.f32 %v887_v10  ;;  %v821_v25 = vmax.f32 %v789_v11, 0.0  ;;  %v986_v32 = vmul.f32 %v2838_v45, %v947_v54  ;;  %v1056_v55 = vsub.f32 0.0, %v2853_v22 }
 0x18d   : > { %v983_v31 = vmul.f32 %v2838_v45, %v944_v19  ;;  %v2860_v39 = vmul.f32 0.015625, %v551_v14  ;;  %v2862_v43 = vmul.f32 0.015625, %v545_v17 }
 0x18e   : > { %v885_v63 = vadd.f32 1e-05, %v821_v25  ;;  %v2868_v47 = vadd.f32 %v2847_v2, %v986_v32  ;;  %v1090_v50 = vmul.f32 1.442695, %v1056_v55 }
 0x18f   : > { %v547_v46 = vpop.xlane.xlu1 %546  ;;  %v677_v52 = vpop.xlane.xlu0 %676  ;;  %v2865_v51 = vadd.f32 %v2847_v2, %v983_v31  ;;  %v763_v54 = vmul.f32 %v2860_v39, %v2860_v39  ;;  %v760_v58 = vmul.f32 %v2862_v43, %v2862_v43 }
 0x190   : > { %2196 = vrsqrt.f32 %v885_v63  ;;  %v730_v59 = vmul.f32 0.015625, %v677_v52  ;;  %v1057_v7 = vsub.f32 0.0, %v2868_v47  ;;  %v2882_v11 = vmul.f32 0.015625, %v547_v46 }
 0x191   : > { %v2189_v60 = vpop.eup %2188  ;;  %v1054_v5 = vsub.f32 0.0, %v2865_v51  ;;  %2198 = vpow2.f32 %v1090_v50  ;;  %v852_v63 = vsub.f32 %v2618_v1, %v2824_v57  ;;  %v855_v52 = vsub.f32 %v2627_v6, %v2826_v8 }
 0x192   : > { %v2191_v56 = vpop.eup %2190  ;;  %v794_v26 = vsub.f32 %v730_v59, %v762_v49  ;;  %v945_v10 = vmul.f32 %v2189_v60, %v849_v48  ;;  %v1092_v0 = vmul.f32 1.442695, %v1057_v7 }
 0x193   : > { %v679_v14 = vpop.xlane.xlu1 %678  ;;  %v673_v17 = vpop.xlane.xlu0 %672  ;;  %v1086_v19 = vmul.f32 1.442695, %v1054_v5  ;;  %v950_v35 = vmul.f32 %v2191_v56, %v854_v4  ;;  %v761_v4 = vmul.f32 %v2882_v11, %v2882_v11 }
 0x194   : > { %v826_v25 = vmax.f32 %v794_v26, 0.0  ;;  %v731_v31 = vmul.f32 0.015625, %v679_v14  ;;  %v728_v32 = vmul.f32 0.015625, %v673_v17  ;;  %v984_v55 = vmul.f32 %v2838_v45, %v945_v10 }
 0x195   : > { %2200 = vpow2.f32 %v1086_v19  ;;  %v989_v46 = vmul.f32 %v2838_v45, %v950_v35  ;;  %v2193_v50 = vpop.eup %2192 }
 0x196   : > { %v890_v48 = vadd.f32 1e-05, %v826_v25  ;;  %v795_v49 = vsub.f32 %v731_v31, %v763_v54  ;;  %v792_v59 = vsub.f32 %v728_v32, %v760_v58  ;;  %v2891_v60 = vadd.f32 %v2847_v2, %v984_v55 }
 0x197   : > { %v675_v5 = vpop.xlane.xlu1 %674  ;;  %v557_v7 = vpop.xlane.xlu0 %556  ;;  %2202 = vpow2.f32 %v1092_v0  ;;  %v948_v1 = vmul.f32 %v2193_v50, %v852_v63  ;;  %v2896_v57 = vadd.f32 %v2847_v2, %v989_v46  ;;  %v853_v50 = vsub.f32 %v2633_v9, %v2833_v34 }
 0x198   : > { %2204 = vrsqrt.f32 %v890_v48  ;;  %v827_v6 = vmax.f32 %v795_v49, 0.0  ;;  %v824_v8 = vmax.f32 %v792_v59, 0.0  ;;  %v729_v56 = vmul.f32 0.015625, %v675_v5 }
 0x199   : > { %v2195_v26 = vpop.eup %2194  ;;  %v2898_v54 = vmul.f32 0.015625, %v557_v7  ;;  %v1055_v58 = vsub.f32 0.0, %v2891_v60  ;;  %v987_v10 = vmul.f32 %v2838_v45, %v948_v1  ;;  %v1060_v55 = vsub.f32 0.0, %v2896_v57 }
 0x19a   : > { %v891_v14 = vadd.f32 1e-05, %v827_v6  ;;  %v888_v17 = vadd.f32 1e-05, %v824_v8  ;;  %v793_v19 = vsub.f32 %v729_v56, %v761_v4  ;;  %v951_v35 = vmul.f32 %v2195_v26, %v855_v52 }
 0x19b   : > { %v559_v0 = vpop.xlane.xlu1 %558  ;;  %v553_v25 = vpop.xlane.xlu0 %552  ;;  %v1088_v31 = vmul.f32 1.442695, %v1055_v58  ;;  %v2903_v32 = vadd.f32 %v2847_v2, %v987_v10  ;;  %v858_v59 = vsub.f32 %v2638_v12, %v2855_v29  ;;  %v766_v5 = vmul.f32 %v2898_v54, %v2898_v54 }
 0x19c   : > { %2206 = vrsqrt.f32 %v891_v14  ;;  %v825_v63 = vmax.f32 %v793_v19, 0.0  ;;  %v990_v49 = vmul.f32 %v2838_v45, %v951_v35  ;;  %v2914_v7 = vmul.f32 0.015625, %v559_v0 }
 0x19d   : > { %v2197_v46 = vpop.eup %2196  ;;  %2208 = vrsqrt.f32 %v888_v17  ;;  %v1058_v48 = vsub.f32 0.0, %v2903_v32  ;;  %v2916_v1 = vmul.f32 0.015625, %v553_v25  ;;  %v1098_v34 = vmul.f32 1.442695, %v1060_v55 }
 0x19e   : > { %v2199_v52 = vpop.eup %2198  ;;  %v889_v4 = vadd.f32 1e-05, %v825_v63  ;;  %2210 = vpow2.f32 %v1088_v31  ;;  %v949_v9 = vmul.f32 %v2197_v46, %v853_v50  ;;  %v859_v12 = vsub.f32 %v2648_v16, %v2860_v39 }
 0x19f   : > { %v555_v6 = vpop.xlane.xlu1 %554  ;;  %v685_v8 = vpop.xlane.xlu0 %684  ;;  %v1152_v26 = vadd.f32 1.0, %v2199_v52  ;;  %v1094_v58 = vmul.f32 1.442695, %v1058_v48  ;;  %v856_v29 = vsub.f32 %v2645_v15, %v2862_v43  ;;  %v2924_v14 = vadd.f32 %v2847_v2, %v990_v49 }
 0x1a0   : > { %2212 = vrsqrt.f32 %v889_v4  ;;  %v734_v56 = vmul.f32 0.015625, %v685_v8  ;;  %v988_v10 = vmul.f32 %v2838_v45, %v949_v9  ;;  %v767_v19 = vmul.f32 %v2914_v7, %v2914_v7 }
 0x1a1   : > { %v2928_v35 = vmul.f32 0.015625, %v555_v6  ;;  %2214 = vpow2.f32 %v1094_v58  ;;  %v764_v25 = vmul.f32 %v2916_v1, %v2916_v1  ;;  %v1061_v43 = vsub.f32 0.0, %v2924_v14 }
 0x1a2   : > { %v2201_v17 = vpop.eup %2200  ;;  %v798_v0 = vsub.f32 %v734_v56, %v766_v5  ;;  %v2933_v15 = vadd.f32 %v2847_v2, %v988_v10  ;;  %2216 = vpow2.f32 %v1098_v34  ;;  %v857_v48 = vsub.f32 %v2653_v18, %v2882_v11 }
 0x1a3   : > { %v687_v16 = vpop.xlane.xlu1 %686  ;;  %v681_v39 = vpop.xlane.xlu0 %680  ;;  %2218 = vrcp.f32 %v1152_v26  ;;  %v765_v5 = vmul.f32 %v2928_v35, %v2928_v35  ;;  %v1100_v9 = vmul.f32 1.442695, %v1061_v43  ;;  %v1150_v26 = vadd.f32 1.0, %v2201_v17 }
 0x1a4   : > { %v2203_v31 = vpop.eup %2202  ;;  %v830_v55 = vmax.f32 %v798_v0, 0.0  ;;  %v735_v63 = vmul.f32 0.015625, %v687_v16  ;;  %v732_v46 = vmul.f32 0.015625, %v681_v39  ;;  %v1059_v4 = vsub.f32 0.0, %v2933_v15 }
 0x1a5   : > { %v2205_v50 = vpop.eup %2204  ;;  %v1153_v52 = vadd.f32 1.0, %v2203_v31 }
 0x1a6   : > { %v799_v6 = vsub.f32 %v735_v63, %v767_v19  ;;  %v796_v8 = vsub.f32 %v732_v46, %v764_v25  ;;  %v894_v34 = vadd.f32 1e-05, %v830_v55  ;;  %v1096_v10 = vmul.f32 1.442695, %v1059_v4 }
 0x1a7   : > { %v683_v56 = vpop.xlane.xlu1 %682  ;;  %v565_v58 = vpop.xlane.xlu0 %564  ;;  %2220 = vrcp.f32 %v1153_v52  ;;  %v954_v16 = vmul.f32 %v2205_v50, %v858_v59 }
 0x1a8   : > { %v831_v0 = vmax.f32 %v799_v6, 0.0  ;;  %v828_v18 = vmax.f32 %v796_v8, 0.0  ;;  %v733_v11 = vmul.f32 0.015625, %v683_v56  ;;  %v2947_v19 = vmul.f32 0.015625, %v565_v58 }
 0x1a9   : > { %v2207_v39 = vpop.eup %2206  ;;  %2222 = vpow2.f32 %v1096_v10  ;;  %v993_v56 = vmul.f32 %v2838_v45, %v954_v16 }
 0x1aa   : > { %v2209_v25 = vpop.eup %2208  ;;  %v895_v43 = vadd.f32 1e-05, %v831_v0  ;;  %v892_v55 = vadd.f32 1e-05, %v828_v18  ;;  %v797_v17 = vsub.f32 %v733_v11, %v765_v5  ;;  %2224 = vpow2.f32 %v1100_v9 }
 0x1ab   : > { %v567_v46 = vpop.xlane.xlu1 %566  ;;  %v561_v59 = vpop.xlane.xlu0 %560  ;;  %2226 = vrcp.f32 %v1150_v26  ;;  %v952_v50 = vmul.f32 %v2209_v25, %v856_v29  ;;  %v955_v52 = vmul.f32 %v2207_v39, %v859_v12  ;;  %v770_v5 = vmul.f32 %v2947_v19, %v2947_v19 }
 0x1ac   : > { %v2211_v4 = vpop.eup %2210  ;;  %2228 = vrsqrt.f32 %v894_v34  ;;  %v829_v6 = vmax.f32 %v797_v17, 0.0  ;;  %v2951_v8 = vmul.f32 0.015625, %v567_v46  ;;  %v2959_v29 = vmul.f32 0.015625, %v561_v59 }
 0x1ad   : > { %v2213_v58 = vpop.eup %2212  ;;  %2230 = vrsqrt.f32 %v892_v55  ;;  %v1151_v9 = vadd.f32 1.0, %v2211_v4  ;;  %v991_v10 = vmul.f32 %v2838_v45, %v952_v50  ;;  %v994_v39 = vmul.f32 %v2838_v45, %v955_v52 }
 0x1ae   : > { %2232 = vrsqrt.f32 %v895_v43  ;;  %v893_v0 = vadd.f32 1e-05, %v829_v6  ;;  %v2215_v34 = vpop.eup %2214  ;;  %v771_v26 = vmul.f32 %v2951_v8, %v2951_v8  ;;  %v953_v16 = vmul.f32 %v2213_v58, %v857_v48 }
 0x1af   : > { %v563_v18 = vpop.xlane.xlu1 %562  ;;  %v693_v11 = vpop.xlane.xlu0 %692  ;;  %2234 = vrcp.f32 %v1151_v9  ;;  %v1154_v17 = vadd.f32 1.0, %v2215_v34  ;;  %v2970_v6 = vadd.f32 %v2847_v2, %v991_v10  ;;  %v768_v48 = vmul.f32 %v2959_v29, %v2959_v29 }
 0x1b0   : > { %v2217_v25 = vpop.eup %2216  ;;  %2236 = vrsqrt.f32 %v893_v0  ;;  %v738_v55 = vmul.f32 0.015625, %v693_v11  ;;  %v2966_v59 = vmul.f32 0.015625, %v563_v18  ;;  %v992_v4 = vmul.f32 %v2838_v45, %v953_v16 }
 0x1b1   : > { %v2219_v46 = vpop.eup %2218  ;;  %v1156_v50 = vadd.f32 1.0, %v2217_v25  ;;  %2238 = vrcp.f32 %v1154_v17  ;;  %v1062_v18 = vsub.f32 0.0, %v2970_v6  ;;  %v2981_v11 = vadd.f32 %v2847_v2, %v993_v56 }
 0x1b2   : > { %v802_v58 = vsub.f32 %v738_v55, %v770_v5  ;;  %v2977_v34 = vadd.f32 %v2847_v2, %v992_v4  ;;  %v2984_v12 = vmul.f32 %v2219_v46, %v2853_v22  ;;  %v769_v5 = vmul.f32 %v2966_v59, %v2966_v59 }
 0x1b3   : > { %v695_v9 = vpop.xlane.xlu1 %694  ;;  %v689_v0 = vpop.xlane.xlu0 %688  ;;  %2240 = vrcp.f32 %v1156_v50  ;;  %v1102_v17 = vmul.f32 1.442695, %v1062_v18  ;;  %v2990_v50 = vadd.f32 %v2847_v2, %v994_v39  ;;  %v865_v56 = vsub.f32 %v2707_v44, %v2966_v59 }
 0x1b4   : > { %3527 = vst [vmem:[#allocation7_spill] sm:$0xff] %v2977_v34  ;;  %v2221_v10 = vpop.eup %2220  ;;  %v834_v16 = vmax.f32 %v802_v58, 0.0  ;;  %v739_v25 = vmul.f32 0.015625, %v695_v9  ;;  %v736_v43 = vmul.f32 0.015625, %v689_v0  ;;  %v1063_v55 = vsub.f32 0.0, %v2977_v34 }
 0x1b5   : > { %v1217_v9 = vmul.f32 %v2221_v10, %v2868_v47  ;;  %2242 = vpow2.f32 %v1102_v17  ;;  %v1064_v49 = vsub.f32 0.0, %v2981_v11  ;;  %v1065_v47 = vsub.f32 0.0, %v2990_v50 }
 0x1b6   : > { %v2223_v4 = vpop.eup %2222  ;;  %v803_v52 = vsub.f32 %v739_v25, %v771_v26  ;;  %v800_v58 = vsub.f32 %v736_v43, %v768_v48  ;;  %v1104_v63 = vmul.f32 1.442695, %v1063_v55  ;;  %v898_v38 = vadd.f32 1e-05, %v834_v16 }
 0x1b7   : > { %v2225_v0 = vpop.eup %2224  ;;  %v691_v22 = vpop.xlane.xlu1 %690  ;;  %v1155_v31 = vadd.f32 1.0, %v2223_v4  ;;  %v3534_v44 = vsub.f32 %v2699_v41, %v2951_v8 }
 0x1b8   : > { %v573_v46 = vpop.xlane.xlu0 %572  ;;  %v2227_v18 = vpop.eup %2226  ;;  %v835_v39 = vmax.f32 %v803_v52, 0.0  ;;  %v832_v33 = vmax.f32 %v800_v58, 0.0  ;;  %v737_v42 = vmul.f32 0.015625, %v691_v22  ;;  %v1157_v26 = vadd.f32 1.0, %v2225_v0 }
 0x1b9   : > { %v2229_v37 = vpop.eup %2228  ;;  %v2996_v34 = vmul.f32 0.015625, %v573_v46  ;;  %2244 = vrcp.f32 %v1155_v31  ;;  %v1214_v16 = vmul.f32 %v2227_v18, %v2865_v51  ;;  %v1264_v52 = vpack.c.bf16 %v1217_v9, %v2984_v12 }
 0x1ba   : > { %v2231_v43 = vpop.eup %2230  ;;  %v899_v48 = vadd.f32 1e-05, %v835_v39  ;;  %v896_v10 = vadd.f32 1e-05, %v832_v33  ;;  %v801_v25 = vsub.f32 %v737_v42, %v769_v5  ;;  %2246 = vpow2.f32 %v1104_v63 }
 0x1bb   : > { %v2233_v55 = vpop.eup %2232  ;;  %v575_v17 = vpop.xlane.xlu1 %574  ;;  %2248 = vrcp.f32 %v1157_v26  ;;  %v1106_v58 = vmul.f32 1.442695, %v1064_v49  ;;  %v774_v0 = vmul.f32 %v2996_v34, %v2996_v34  ;;  %v1108_v63 = vmul.f32 1.442695, %v1065_v47 }
 0x1bc   : > { %v569_v4 = vpop.xlane.xlu0 %568  ;;  %v2235_v22 = vpop.eup %2234  ;;  %2250 = vrsqrt.f32 %v898_v38  ;;  %v833_v31 = vmax.f32 %v801_v25, 0.0  ;;  %v3003_v46 = vmul.f32 0.015625, %v575_v17  ;;  %v3528_v51 = vsub.f32 %v2669_v27, %v2916_v1 }
 0x1bd   : > { %v2237_v33 = vpop.eup %2236  ;;  %2252 = vrsqrt.f32 %v899_v48  ;;  %v1215_v42 = vmul.f32 %v2235_v22, %v2891_v60  ;;  %v870_v38 = vsub.f32 %v2720_v53, %v2996_v34  ;;  %v3011_v49 = vmul.f32 0.015625, %v569_v4 }
 0x1be   : > { %v956_v5 = vmul.f32 %v2231_v43, %v3528_v51  ;;  %2254 = vrsqrt.f32 %v896_v10  ;;  %v897_v12 = vadd.f32 1e-05, %v833_v31  ;;  %v2239_v9 = vpop.eup %2238  ;;  %v3529_v60 = vsub.f32 %v2677_v30, %v2928_v35 }
 0x1bf   : > { %v1263_v18 = vpack.c.bf16 %v1215_v42, %v1214_v16  ;;  %v571_v39 = vpop.xlane.xlu1 %570  ;;  %2256 = vpow2.f32 %v1106_v58  ;;  %v3530_v27 = vsub.f32 %v2663_v24, %v2898_v54  ;;  %v775_v48 = vmul.f32 %v3003_v46, %v3003_v46 }
 0x1c0   : > { %v701_v26 = vpop.xlane.xlu0 %700  ;;  %v957_v47 = vmul.f32 %v2237_v33, %v3529_v60  ;;  %v2241_v43 = vpop.eup %2240  ;;  %2258 = vrsqrt.f32 %v897_v12  ;;  %v871_v10 = vsub.f32 %v2735_v62, %v3003_v46  ;;  %v3023_v17 = vmul.f32 0.015625, %v571_v39 }
 0x1c1   : > { %v958_v1 = vmul.f32 %v2229_v37, %v3530_v27  ;;  %v742_v25 = vmul.f32 0.015625, %v701_v26  ;;  %2036 = vmatprep.mubr.bf16.mxu0 %v1263_v18  ;;  %2260 = vpow2.f32 %v1108_v63  ;;  %v995_v30 = vmul.f32 %v2838_v45, %v956_v5 }
 0x1c2   : > { %v996_v35 = vmul.f32 %v2838_v45, %v957_v47  ;;  %v772_v24 = vmul.f32 %v3011_v49, %v3011_v49  ;;  %2037 = vmatmul.mubr.bf16.vlgmr.msra.gmra.mxu0 %v1264_v52  ;;  %v1218_v54 = vmul.f32 %v2239_v9, %v2903_v32  ;;  %v3531_v4 = vsub.f32 %v2672_v28, %v2914_v7  ;;  %v2243_v52 = vpop.eup %2242 }
 0x1c3   : > { %v806_v37 = vsub.f32 %v742_v25, %v774_v0  ;;  %v703_v58 = vpop.xlane.xlu1 %702  ;;  %v1220_v31 = vmul.f32 %v2241_v43, %v2896_v57  ;;  %v3035_v33 = vadd.f32 %v2847_v2, %v995_v30  ;;  %v997_v63 = vmul.f32 %v2838_v45, %v958_v1 }
 0x1c4   : > { %v959_v16 = vmul.f32 %v2233_v55, %v3531_v4  ;;  %v697_v22 = vpop.xlane.xlu0 %696  ;;  %v3038_v42 = vadd.f32 %v2847_v2, %v996_v35  ;;  %v743_v51 = vmul.f32 0.015625, %v703_v58  ;;  %v773_v28 = vmul.f32 %v3023_v17, %v3023_v17 }
 0x1c5   : > { %v838_v0 = vmax.f32 %v806_v37, 0.0  ;;  %v740_v32 = vmul.f32 0.015625, %v697_v22  ;;  %v1158_v7 = vadd.f32 1.0, %v2243_v52  ;;  %v1066_v57 = vsub.f32 0.0, %v3035_v33 }
 0x1c6   : > { %v998_v5 = vmul.f32 %v2838_v45, %v959_v16  ;;  %v1067_v55 = vsub.f32 0.0, %v3038_v42  ;;  %v2245_v12 = vpop.eup %2244  ;;  %v807_v18 = vsub.f32 %v743_v51, %v775_v48  ;;  %v3047_v26 = vadd.f32 %v2847_v2, %v997_v63 }
 0x1c7   : > { %v902_v9 = vadd.f32 1e-05, %v838_v0  ;;  %v804_v39 = vsub.f32 %v740_v32, %v772_v24  ;;  %v2247_v60 = vpop.eup %2246  ;;  %v699_v47 = vpop.xlane.xlu1 %698  ;;  %v1219_v1 = vmul.f32 %v2245_v12, %v2933_v15  ;;  %2262 = vrcp.f32 %v1158_v7 }
 0x1c8   : > { %v581_v27 = vpop.xlane.xlu0 %580  ;;  %v1110_v43 = vmul.f32 1.442695, %v1066_v57  ;;  %v3051_v25 = vadd.f32 %v2847_v2, %v998_v5  ;;  %v2249_v30 = vpop.eup %2248  ;;  %v839_v35 = vmax.f32 %v807_v18, 0.0  ;;  %v741_v4 = vmul.f32 0.015625, %v699_v47 }
 0x1c9   : > { %2264 = vrsqrt.f32 %v902_v9  ;;  %v836_v37 = vmax.f32 %v804_v39, 0.0  ;;  %v2251_v48 = vpop.eup %2250  ;;  %v3053_v24 = vmul.f32 0.015625, %v581_v27  ;;  %v1265_v16 = vpack.c.bf16 %v1219_v1, %v1218_v54 }
 0x1ca   : > { %v1221_v58 = vmul.f32 %v2249_v30, %v2924_v14  ;;  %v1159_v22 = vadd.f32 1.0, %v2247_v60  ;;  %v2253_v63 = vpop.eup %2252  ;;  %v903_v52 = vadd.f32 1e-05, %v839_v35  ;;  %v805_v0 = vsub.f32 %v741_v4, %v773_v28 }
 0x1cb   : > { %v900_v15 = vadd.f32 1e-05, %v836_v37  ;;  %2266 = vpow2.f32 %v1110_v43  ;;  %v2255_v51 = vpop.eup %2254  ;;  %v868_v32 = vsub.f32 %v2732_v61, %v3011_v49  ;;  %v869_v5 = vsub.f32 %v2743_v3, %v3023_v17  ;;  %2040 = vmatprep.mubr.bf16.mxu1 %v1265_v16  ;;  %v583_v7 = vpop.xlane.xlu1 %582 }
 0x1cc   : > { %v1266_v57 = vpack.c.bf16 %v1221_v58, %v1220_v31  ;;  %v577_v12 = vpop.xlane.xlu0 %576  ;;  %2268 = vrcp.f32 %v1159_v22  ;;  %v2257_v54 = vpop.eup %2256  ;;  %v837_v14 = vmax.f32 %v805_v0, 0.0  ;;  %v3060_v9 = vmul.f32 0.015625, %v583_v7 }
 0x1cd   : > { %v3062_v18 = vmul.f32 0.015625, %v577_v12  ;;  %v1112_v28 = vmul.f32 1.442695, %v1067_v55  ;;  %v2259_v39 = vpop.eup %2258  ;;  %2270 = vrsqrt.f32 %v903_v52  ;;  %v1160_v60 = vadd.f32 1.0, %v2257_v54 }
 0x1ce   : > { %2041 = vmatmul.mubr.bf16.vlgmr.msra.gmra.mxu1 %v1266_v57  ;;  %v1068_v47 = vsub.f32 0.0, %v3047_v26  ;;  %v1069_v27 = vsub.f32 0.0, %v3051_v25  ;;  %v2261_v1 = vpop.eup %2260  ;;  %2272 = vrsqrt.f32 %v900_v15  ;;  %v901_v31 = vadd.f32 1e-05, %v837_v14 }
 0x1cf   : > { %v778_v43 = vmul.f32 %v3053_v24, %v3053_v24  ;;  %v874_v30 = vsub.f32 %v2756_v13, %v3053_v24  ;;  %v779_v55 = vmul.f32 %v3060_v9, %v3060_v9  ;;  %v579_v35 = vpop.xlane.xlu1 %578  ;;  %v1161_v4 = vadd.f32 1.0, %v2261_v1  ;;  %v3189_v13 = vld [vmem:[%s3513_s3] ss:$0 sm:$0xff] }
 0x1d0   : > { %v709_v37 = vpop.xlane.xlu0 %708  ;;  %2274 = vrcp.f32 %v1160_v60  ;;  %v1114_v16 = vmul.f32 1.442695, %v1068_v47  ;;  %v875_v58 = vsub.f32 %v2768_v21, %v3060_v9  ;;  %v776_v22 = vmul.f32 %v3062_v18, %v3062_v18 }
 0x1d1   : > { %v746_v52 = vmul.f32 0.015625, %v709_v37  ;;  %v1116_v15 = vmul.f32 1.442695, %v1069_v27  ;;  %2276 = vrcp.f32 %v1161_v4  ;;  %v3532_v0 = vsub.f32 %v2696_v40, %v2959_v29 }
 0x1d2   : > { %v961_v57 = vmul.f32 %v2259_v39, %v865_v56  ;;  %v3533_v12 = vsub.f32 %v2687_v36, %v2947_v19  ;;  %v872_v14 = vsub.f32 %v2765_v20, %v3062_v18  ;;  %v3087_v60 = vmul.f32 0.015625, %v579_v35 }
 0x1d3   : > { %v960_v7 = vmul.f32 %v2255_v51, %v3532_v0  ;;  %v810_v47 = vsub.f32 %v746_v52, %v778_v43  ;;  %2278 = vpow2.f32 %v1112_v28  ;;  %v711_v27 = vpop.xlane.xlu1 %710  ;;  %v963_v59 = vmul.f32 %v2253_v63, %v3534_v44 }
 0x1d4   : > { %v962_v54 = vmul.f32 %v2251_v48, %v3533_v12  ;;  %v705_v1 = vpop.xlane.xlu0 %704  ;;  %2280 = vpow2.f32 %v1114_v16  ;;  %v1000_v29 = vmul.f32 %v2838_v45, %v961_v57  ;;  %v2263_v36 = vpop.eup %2262  ;;  %v747_v56 = vmul.f32 0.015625, %v711_v27 }
 0x1d5   : > { %v999_v40 = vmul.f32 %v2838_v45, %v960_v7  ;;  %v842_v19 = vmax.f32 %v810_v47, 0.0  ;;  %v744_v48 = vmul.f32 0.015625, %v705_v1  ;;  %2282 = vpow2.f32 %v1116_v15 }
 0x1d6   : > { %v2265_v51 = vpop.eup %2264  ;;  %2284 = vrsqrt.f32 %v901_v31  ;;  %v3098_v39 = vadd.f32 %v2847_v2, %v1000_v29  ;;  %v1001_v43 = vmul.f32 %v2838_v45, %v962_v54  ;;  %v777_v35 = vmul.f32 %v3087_v60, %v3087_v60 }
 0x1d7   : > { %v3095_v28 = vadd.f32 %v2847_v2, %v999_v40  ;;  %v906_v41 = vadd.f32 1e-05, %v842_v19  ;;  %v811_v8 = vsub.f32 %v747_v56, %v779_v55  ;;  %v808_v63 = vsub.f32 %v744_v48, %v776_v22  ;;  %v707_v16 = vpop.xlane.xlu1 %706  ;;  %v3535_v22 = vld [vmem:[#allocation7_spill] sm:$0xff] }
 0x1d8   : > { %v2267_v37 = vpop.eup %2266  ;;  %v873_v4 = vsub.f32 %v2773_v23, %v3087_v60  ;;  %v589_v31 = vpop.xlane.xlu0 %588  ;;  %v1222_v52 = vmul.f32 %v2263_v36, %v2970_v6  ;;  %v1002_v0 = vmul.f32 %v2838_v45, %v963_v59  ;;  %v745_v54 = vmul.f32 0.015625, %v707_v16 }
 0x1d9   : > { %v1070_v15 = vsub.f32 0.0, %v3095_v28  ;;  %v2269_v7 = vpop.eup %2268  ;;  %v843_v57 = vmax.f32 %v811_v8, 0.0  ;;  %v840_v12 = vmax.f32 %v808_v63, 0.0  ;;  %v1071_v47 = vsub.f32 0.0, %v3098_v39 }
 0x1da   : > { %v3109_v55 = vmul.f32 0.015625, %v589_v31  ;;  %v1223_v27 = vmul.f32 %v2269_v7, %v3535_v22  ;;  %v1162_v1 = vadd.f32 1.0, %v2267_v37  ;;  %v3113_v40 = vadd.f32 %v2847_v2, %v1001_v43  ;;  %v3115_v29 = vpop.eup %2270 }
 0x1db   : > { %2286 = vrsqrt.f32 %v906_v41  ;;  %v907_v6 = vadd.f32 1e-05, %v843_v57  ;;  %v904_v44 = vadd.f32 1e-05, %v840_v12  ;;  %v809_v59 = vsub.f32 %v745_v54, %v777_v35  ;;  %v2273_v36 = vpop.eup %2272  ;;  %v591_v56 = vpop.xlane.xlu1 %590 }
 0x1dc   : > { %v1267_v19 = vpack.c.bf16 %v1223_v27, %v1222_v52  ;;  %v585_v48 = vpop.xlane.xlu0 %584  ;;  %2288 = vrcp.f32 %v1162_v1  ;;  %v1118_v8 = vmul.f32 1.442695, %v1070_v15  ;;  %v966_v63 = vmul.f32 %v2265_v51, %v870_v38 }
 0x1dd   : > { %v2275_v37 = vpop.eup %2274  ;;  %v841_v16 = vmax.f32 %v809_v59, 0.0  ;;  %v3120_v43 = vmul.f32 0.015625, %v591_v56  ;;  %v3122_v31 = vmul.f32 0.015625, %v585_v48  ;;  %v1120_v41 = vmul.f32 1.442695, %v1071_v47  ;;  %v3536_v56 = vld [vmem:[#allocation4_spill] sm:$0xff] }
 0x1de   : > { %2290 = vrsqrt.f32 %v904_v44  ;;  %v782_v35 = vmul.f32 %v3109_v55, %v3109_v55  ;;  %2044 = vmatprep.mubr.bf16.mxu1 %v1267_v19  ;;  %v3127_v52 = vadd.f32 %v2847_v2, %v1002_v0  ;;  %v1072_v15 = vsub.f32 0.0, %v3113_v40  ;;  %v2277_v7 = vpop.eup %2276 }
 0x1df   : > { %2292 = vrsqrt.f32 %v907_v6  ;;  %v905_v53 = vadd.f32 1e-05, %v841_v16  ;;  %v3132_v34 = vmul.f32 %v3120_v43, %v3120_v43  ;;  %v1224_v38 = vmul.f32 %v2275_v37, %v2981_v11  ;;  %v587_v54 = vpop.xlane.xlu1 %586 }
 0x1e0   : > { %v2279_v51 = vpop.eup %2278  ;;  %v1225_v57 = vmul.f32 %v2277_v7, %v2990_v50  ;;  %v780_v12 = vmul.f32 %v3122_v31, %v3122_v31  ;;  %v713_v0 = vpop.xlane.xlu0 %712  ;;  %2294 = vpow2.f32 %v1118_v8  ;;  %v1073_v47 = vsub.f32 0.0, %v3127_v52 }
 0x1e1   : > { %v2281_v22 = vpop.eup %2280  ;;  %2296 = vrsqrt.f32 %v905_v53  ;;  %v3139_v27 = vmul.f32 0.015625, %v587_v54  ;;  %v748_v1 = vmul.f32 0.015625, %v713_v0  ;;  %v1163_v6 = vadd.f32 1.0, %v2279_v51 }
 0x1e2   : > { %v2283_v44 = vpop.eup %2282  ;;  %v1268_v59 = vpack.c.bf16 %v1225_v57, %v1224_v38  ;;  %v1164_v11 = vadd.f32 1.0, %v2281_v22  ;;  %2298 = vpow2.f32 %v1120_v41  ;;  %v1122_v19 = vmul.f32 1.442695, %v1072_v15 }
 0x1e3   : > { %v2285_v50 = vpop.eup %2284  ;;  %v876_v48 = vsub.f32 %v3536_v56, %v3122_v31  ;;  %v781_v8 = vmul.f32 %v3139_v27, %v3139_v27  ;;  %v812_v37 = vsub.f32 %v748_v1, %v780_v12  ;;  %2300 = vrcp.f32 %v1163_v6  ;;  %v715_v16 = vpop.xlane.xlu1 %714 }
 0x1e4   : > { %2045 = vmatmul.mubr.bf16.gmra.mxu1 %v1268_v59  ;;  %v717_v7 = vpop.xlane.xlu0 %716  ;;  %v1165_v53 = vadd.f32 1.0, %v2283_v44  ;;  %2302 = vrcp.f32 %v1164_v11  ;;  %v1124_v51 = vmul.f32 1.442695, %v1073_v47  ;;  %v964_v41 = vmul.f32 %v2273_v36, %v868_v32 }
 0x1e5   : > { %v844_v15 = vmax.f32 %v812_v37, 0.0  ;;  %v749_v38 = vmul.f32 0.015625, %v715_v16  ;;  %v750_v57 = vmul.f32 0.015625, %v717_v7  ;;  %2304 = vpow2.f32 %v1122_v19 }
 0x1e6   : > { %2306 = vrcp.f32 %v1165_v53  ;;  %v965_v12 = vmul.f32 %v2285_v50, %v869_v5  ;;  %v1003_v54 = vmul.f32 %v2838_v45, %v964_v41  ;;  %v967_v0 = vmul.f32 %v3115_v29, %v871_v10 }
 0x1e7   : > { %v908_v47 = vadd.f32 1e-05, %v844_v15  ;;  %v813_v22 = vsub.f32 %v749_v38, %v781_v8  ;;  %v814_v61 = vsub.f32 %v750_v57, %v782_v35  ;;  %2308 = vpow2.f32 %v1124_v51  ;;  %v719_v32 = vpop.xlane.xlu1 %718 }
 0x1e8   : > { %v2287_v49 = vpop.eup %2286  ;;  %v1004_v36 = vmul.f32 %v2838_v45, %v965_v12  ;;  %v3158_v1 = vadd.f32 %v2847_v2, %v1003_v54  ;;  %v1005_v3 = vmul.f32 %v2838_v45, %v966_v63  ;;  %v1006_v17 = vmul.f32 %v2838_v45, %v967_v0 }
 0x1e9   : > { %v2289_v5 = vpop.eup %2288  ;;  %2310 = vrsqrt.f32 %v908_v47  ;;  %v845_v62 = vmax.f32 %v813_v22, 0.0  ;;  %v846_v46 = vmax.f32 %v814_v61, 0.0  ;;  %v751_v10 = vmul.f32 0.015625, %v719_v32  ;;  %v3202_v61 = vld [vmem:[%s3514_s4] ss:$0 sm:$0xff] }
 0x1ea   : > { %v1226_v29 = vmul.f32 %v2289_v5, %v3035_v33  ;;  %v3164_v35 = vadd.f32 %v2847_v2, %v1004_v36  ;;  %v1074_v6 = vsub.f32 0.0, %v3158_v1  ;;  %v3168_v44 = vadd.f32 %v2847_v2, %v1005_v3 }
 0x1eb   : > { %v2291_v59 = vpop.eup %2290  ;;  %v909_v11 = vadd.f32 1e-05, %v845_v62  ;;  %v910_v63 = vadd.f32 1e-05, %v846_v46  ;;  %v815_v45 = vsub.f32 %v751_v10, %v3132_v34  ;;  %v3172_v19 = vadd.f32 %v2847_v2, %v1006_v17 }
 0x1ec   : > { %v2293_v50 = vpop.eup %2292  ;;  %v1075_v8 = vsub.f32 0.0, %v3164_v35  ;;  %v1126_v33 = vmul.f32 1.442695, %v1074_v6  ;;  %v1076_v37 = vsub.f32 0.0, %v3168_v44  ;;  %v968_v16 = vmul.f32 %v2291_v59, %v872_v14 }
 0x1ed   : > { %v2295_v7 = vpop.eup %2294  ;;  %2312 = vrsqrt.f32 %v909_v11  ;;  %v847_v53 = vmax.f32 %v815_v45, 0.0  ;;  %v1077_v51 = vsub.f32 0.0, %v3172_v19  ;;  %v970_v2 = vmul.f32 %v2287_v49, %v874_v30 }
 0x1ee   : > { %v2297_v34 = vpop.eup %2296  ;;  %2314 = vrsqrt.f32 %v910_v63  ;;  %v1166_v41 = vadd.f32 1.0, %v2295_v7  ;;  %v1128_v15 = vmul.f32 1.442695, %v1075_v8  ;;  %v1130_v38 = vmul.f32 1.442695, %v1076_v37  ;;  %v3538_v7 = vld [vmem:[#allocation3_spill] sm:$0xff] }
 0x1ef   : > { %v2299_v57 = vpop.eup %2298  ;;  %v911_v12 = vadd.f32 1e-05, %v847_v53  ;;  %2316 = vpow2.f32 %v1126_v33  ;;  %v1132_v54 = vmul.f32 1.442695, %v1077_v51  ;;  %v969_v20 = vmul.f32 %v2297_v34, %v873_v4 }
 0x1f0   : > { %v2301_v18 = vpop.eup %2300  ;;  %v1167_v14 = vadd.f32 1.0, %v2299_v57  ;;  %2318 = vrcp.f32 %v1166_v41  ;;  %v1007_v24 = vmul.f32 %v3189_v13, %v968_v16  ;;  %v971_v30 = vmul.f32 %v2293_v50, %v875_v58  ;;  %v3537_v50 = vld [vmem:[#allocation6_spill] sm:$0xff] }
 0x1f1   : > { %v2303_v0 = vpop.eup %2302  ;;  %2320 = vrsqrt.f32 %v911_v12  ;;  %v1227_v47 = vmul.f32 %v2301_v18, %v3038_v42  ;;  %v1008_v23 = vmul.f32 %v3189_v13, %v969_v20  ;;  %v1009_v60 = vmul.f32 %v3189_v13, %v970_v2 }
 0x1f2   : > { %v2305_v4 = vpop.eup %2304  ;;  %v1228_v22 = vmul.f32 %v2303_v0, %v3047_v26  ;;  %2322 = vrcp.f32 %v1167_v14  ;;  %v3205_v21 = vadd.f32 %v3202_v61, %v1007_v24  ;;  %v1010_v9 = vmul.f32 %v3189_v13, %v971_v30 }
 0x1f3   : > { %v2307_v58 = vpop.eup %2306  ;;  %v1269_v42 = vpack.c.bf16 %v1227_v47, %v1226_v29  ;;  %v1168_v49 = vadd.f32 1.0, %v2305_v4  ;;  %2324 = vpow2.f32 %v1128_v15  ;;  %v3209_v32 = vadd.f32 %v3202_v61, %v1008_v23 }
 0x1f4   : > { %v2309_v36 = vpop.eup %2308  ;;  %v1229_v26 = vmul.f32 %v2307_v58, %v3051_v25  ;;  %2326 = vpow2.f32 %v1130_v38  ;;  %v1078_v3 = vsub.f32 0.0, %v3205_v21  ;;  %v3214_v17 = vadd.f32 %v3202_v61, %v1009_v60 }
 0x1f5   : > { %2048 = vmatprep.mubr.bf16.mxu1 %v1269_v42  ;;  %v1169_v5 = vadd.f32 1.0, %v2309_v36  ;;  %2328 = vrcp.f32 %v1168_v49  ;;  %v1079_v62 = vsub.f32 0.0, %v3209_v32  ;;  %v3218_v46 = vadd.f32 %v3202_v61, %v1010_v9 }
 0x1f6   : > { %v2311_v10 = vpop.eup %2310  ;;  %v1270_v29 = vpack.c.bf16 %v1229_v26, %v1228_v22  ;;  %2330 = vpow2.f32 %v1132_v54  ;;  %v1134_v6 = vmul.f32 1.442695, %v1078_v3  ;;  %v1080_v25 = vsub.f32 0.0, %v3214_v17 }
 0x1f7   : > { %2332 = vrcp.f32 %v1169_v5  ;;  %v1136_v59 = vmul.f32 1.442695, %v1079_v62  ;;  %v1081_v11 = vsub.f32 0.0, %v3218_v46  ;;  %v972_v63 = vmul.f32 %v2311_v10, %v876_v48 }
 0x1f8   : > { %2049 = vmatmul.mubr.bf16.gmra.mxu1 %v1270_v29  ;;  %2334 = vpow2.f32 %v1134_v6  ;;  %v1138_v45 = vmul.f32 1.442695, %v1080_v25  ;;  %v877_v8 = vsub.f32 %v3537_v50, %v3139_v27  ;;  %v878_v53 = vsub.f32 %v3538_v7, %v3109_v55  ;;  %v3539_v27 = vld [vmem:[#allocation5_spill] sm:$0xff] }
 0x1f9   : > { %2336 = vpow2.f32 %v1136_v59  ;;  %v1140_v33 = vmul.f32 1.442695, %v1081_v11  ;;  %v1011_v37 = vmul.f32 %v3189_v13, %v972_v63  ;;  %v879_v41 = vsub.f32 %v3539_v27, %v3120_v43 }
 0x1fa   : > { %v2313_v16 = vpop.eup %2312  ;;  %2338 = vpow2.f32 %v1138_v45 }
 0x1fb   : > { %v2315_v51 = vpop.eup %2314  ;;  %2340 = vpow2.f32 %v1140_v33  ;;  %v973_v2 = vmul.f32 %v2313_v16, %v877_v8  ;;  %v3231_v31 = vadd.f32 %v3202_v61, %v1011_v37 }
 0x1fc   : > { %v2317_v56 = vpop.eup %2316  ;;  %v974_v48 = vmul.f32 %v2315_v51, %v878_v53 }
 0x1fd   : > { %v2319_v34 = vpop.eup %2318  ;;  %v1170_v15 = vadd.f32 1.0, %v2317_v56  ;;  %v1012_v38 = vmul.f32 %v3189_v13, %v973_v2  ;;  %v1082_v57 = vsub.f32 0.0, %v3231_v31 }
 0x1fe   : > { %v2321_v12 = vpop.eup %2320  ;;  %v1013_v55 = vmul.f32 %v3189_v13, %v974_v48  ;;  %v1230_v30 = vmul.f32 %v2319_v34, %v3095_v28 }
 0x1ff   : > { %v2323_v54 = vpop.eup %2322  ;;  %v3239_v20 = vadd.f32 %v3202_v61, %v1012_v38  ;;  %v1142_v18 = vmul.f32 1.442695, %v1082_v57  ;;  %v975_v14 = vmul.f32 %v2321_v12, %v879_v41  ;;  %2342 = vrcp.f32 %v1170_v15 }
 0x200   : > { %v2325_v24 = vpop.eup %2324  ;;  %v1231_v0 = vmul.f32 %v2323_v54, %v3098_v39  ;;  %v3244_v43 = vadd.f32 %v3202_v61, %v1013_v55 }
 0x201   : > { %v2327_v47 = vpop.eup %2326  ;;  %v1171_v23 = vadd.f32 1.0, %v2325_v24  ;;  %v1083_v60 = vsub.f32 0.0, %v3239_v20  ;;  %2344 = vpow2.f32 %v1142_v18  ;;  %v1014_v4 = vmul.f32 %v3189_v13, %v975_v14 }
 0x202   : > { %v2329_v22 = vpop.eup %2328  ;;  %v1271_v9 = vpack.c.bf16 %v1231_v0, %v1230_v30  ;;  %v1172_v58 = vadd.f32 1.0, %v2327_v47  ;;  %v1084_v42 = vsub.f32 0.0, %v3244_v43 }
 0x203   : > { %v2331_v49 = vpop.eup %2330  ;;  %2346 = vrcp.f32 %v1171_v23  ;;  %v1144_v28 = vmul.f32 1.442695, %v1083_v60  ;;  %v3250_v39 = vadd.f32 %v3202_v61, %v1014_v4  ;;  %v1232_v62 = vmul.f32 %v2329_v22, %v3113_v40 }
 0x204   : > { %v2333_v36 = vpop.eup %2332  ;;  %2052 = vmatprep.mubr.bf16.mxu1 %v1271_v9  ;;  %v1173_v26 = vadd.f32 1.0, %v2331_v49  ;;  %2348 = vrcp.f32 %v1172_v58  ;;  %v1146_v3 = vmul.f32 1.442695, %v1084_v42 }
 0x205   : > { %v2335_v5 = vpop.eup %2334  ;;  %v1233_v13 = vmul.f32 %v2333_v36, %v3127_v52  ;;  %2350 = vpow2.f32 %v1144_v28  ;;  %v1085_v10 = vsub.f32 0.0, %v3250_v39 }
 0x206   : > { %v2337_v29 = vpop.eup %2336  ;;  %2352 = vrcp.f32 %v1173_v26  ;;  %v1174_v6 = vadd.f32 1.0, %v2335_v5 }
 0x207   : > { %v2339_v25 = vpop.eup %2338  ;;  %v1272_v59 = vpack.c.bf16 %v1233_v13, %v1232_v62  ;;  %v1175_v61 = vadd.f32 1.0, %v2337_v29  ;;  %2354 = vpow2.f32 %v1146_v3  ;;  %v1148_v45 = vmul.f32 1.442695, %v1085_v10 }
 0x208   : > { %v2341_v11 = vpop.eup %2340  ;;  %2356 = vrcp.f32 %v1174_v6  ;;  %v1176_v63 = vadd.f32 1.0, %v2339_v25 }
 0x209   : > { %2053 = vmatmul.mubr.bf16.gmra.mxu1 %v1272_v59  ;;  %2358 = vrcp.f32 %v1175_v61  ;;  %v1177_v50 = vadd.f32 1.0, %v2341_v11 }
 0x20a   : > { %2360 = vrcp.f32 %v1176_v63 }
 0x20b   : > { %2362 = vrcp.f32 %v1177_v50 }
 0x20c   : > { %2364 = vpow2.f32 %v1148_v45  ;;  %v2343_v40 = vpop.eup %2342 }
 0x20d   : > { %v1234_v16 = vmul.f32 %v2343_v40, %v3158_v1 }
 0x20e   : > { %v2345_v52 = vpop.eup %2344 }
 0x20f   : > { %v1178_v8 = vadd.f32 1.0, %v2345_v52 }
 0x210   : > { %v2347_v33 = vpop.eup %2346 }
 0x211   : > { %v2349_v37 = vpop.eup %2348  ;;  %v1235_v7 = vmul.f32 %v2347_v33, %v3164_v35  ;;  %2366 = vrcp.f32 %v1178_v8 }
 0x212   : > { %v2351_v53 = vpop.eup %2350  ;;  %v1236_v34 = vmul.f32 %v2349_v37, %v3168_v44 }
 0x213   : > { %v2353_v51 = vpop.eup %2352  ;;  %v1273_v2 = vpack.c.bf16 %v1235_v7, %v1234_v16  ;;  %v1179_v56 = vadd.f32 1.0, %v2351_v53 }
 0x214   : > { %v2355_v48 = vpop.eup %2354  ;;  %v1237_v27 = vmul.f32 %v2353_v51, %v3172_v19 }
 0x215   : > { %v2357_v41 = vpop.eup %2356  ;;  %2056 = vmatprep.mubr.bf16.mxu1 %v1273_v2  ;;  %2368 = vrcp.f32 %v1179_v56  ;;  %v1180_v57 = vadd.f32 1.0, %v2355_v48 }
 0x216   : > { %v2359_v15 = vpop.eup %2358  ;;  %v1274_v38 = vpack.c.bf16 %v1237_v27, %v1236_v34  ;;  %v1238_v1 = vmul.f32 %v2357_v41, %v3205_v21 }
 0x217   : > { %v2361_v12 = vpop.eup %2360  ;;  %v1239_v35 = vmul.f32 %v2359_v15, %v3209_v32  ;;  %2370 = vrcp.f32 %v1180_v57 }
 0x218   : > { %v2363_v55 = vpop.eup %2362  ;;  %2057 = vmatmul.mubr.bf16.gmra.mxu1 %v1274_v38  ;;  %v1240_v19 = vmul.f32 %v2361_v12, %v3214_v17  ;;  %v3271_v17 = vld [vmem:[%s3512_s2 + $0x1] ss:$0 sm:$0xff] }
 0x219   : > { %v2365_v54 = vpop.eup %2364  ;;  %v1275_v18 = vpack.c.bf16 %v1239_v35, %v1238_v1  ;;  %v1241_v14 = vmul.f32 %v2363_v55, %v3218_v46 }
 0x21a   : > { %v1181_v44 = vadd.f32 1.0, %v2365_v54 }
 0x21b   : > { %2060 = vmatprep.mubr.bf16.mxu1 %v1275_v18  ;;  %v1276_v24 = vpack.c.bf16 %v1241_v14, %v1240_v19 }
 0x21c   : > { %2372 = vrcp.f32 %v1181_v44 }
 0x21e   : > { %v2367_v30 = vpop.eup %2366 }
 0x21f   : > { %v1242_v21 = vmul.f32 %v2367_v30, %v3231_v31 }
 0x220   : > { %2061 = vmatmul.mubr.bf16.gmra.mxu1 %v1276_v24 }
 0x222   : > { %v2369_v0 = vpop.eup %2368 }
 0x223   : > { %v1243_v32 = vmul.f32 %v2369_v0, %v3239_v20 }
 0x224   : > { %v2371_v23 = vpop.eup %2370 }
 0x225   : > { %v1277_v47 = vpack.c.bf16 %v1243_v32, %v1242_v21  ;;  %v1244_v46 = vmul.f32 %v2371_v23, %v3244_v43 }
 0x227   : > { %2064 = vmatprep.mubr.bf16.mxu1 %v1277_v47 }
 0x229   : > { %v2373_v60 = vpop.eup %2372 }
 0x22a   : > { %v1245_v4 = vmul.f32 %v2373_v60, %v3250_v39 }
 0x22c   : > { %v1278_v22 = vpack.c.bf16 %v1245_v4, %v1244_v46 }
 0x22e   : > { %2065 = vmatmul.mubr.bf16.gmra.mxu1 %v1278_v22 }
 0x282   : > { %v2038_v31 = vpop.f32.mrf.mxu0 }
 0x283   : > { %v1378_v20 = vadd.f32 %v2038_v31, %v3271_v17 }
 0x284   : > { %v1369_v9 = vpop.f32.mrf.mxu0 }
 0x285   : > { %1498 = vst.msk [vmem:[%s3274_s6 + $0x10] sm:$0xff] %vm318_vm0, %v1378_v20  ;;  %v1370_v43 = vadd.f32 %v3271_v17, %v1369_v9 }
 0x286   : > { %v2039_v58 = vpop.f32.mrf.mxu0 }
 0x287   : > { %1496 = vst.msk [vmem:[%s3274_s6] sm:$0xff] %vm318_vm0, %v1370_v43  ;;  %v1381_v42 = vadd.f32 %v2039_v58, %v3271_v17 }
 0x288   : > { %v1372_v49 = vpop.f32.mrf.mxu0 }
 0x289   : > { %1499 = vst.msk [vmem:[%s3274_s6 + $0x18] sm:$0xff] %vm318_vm0, %v1381_v42  ;;  %v1373_v28 = vadd.f32 %v3271_v17, %v1372_v49 }
 0x28b   : > { %1497 = vst.msk [vmem:[%s3274_s6 + $0x8] sm:$0xff] %vm318_vm0, %v1373_v28 }
 0x28e   : > { %v2042_v39 = vpop.f32.mrf.mxu1 }
 0x28f   : > { %v1394_v36 = vadd.f32 %v2042_v39, %v3271_v17 }
 0x290   : > { %v1385_v26 = vpop.f32.mrf.mxu1 }
 0x291   : > { %1502 = vst.msk [vmem:[%s3274_s6 + $0x30] sm:$0xff] %vm318_vm0, %v1394_v36  ;;  %v1386_v3 = vadd.f32 %v3271_v17, %v1385_v26 }
 0x292   : > { %v2043_v5 = vpop.f32.mrf.mxu1 }
 0x293   : > { %1500 = vst.msk [vmem:[%s3274_s6 + $0x20] sm:$0xff] %vm318_vm0, %v1386_v3  ;;  %v1397_v62 = vadd.f32 %v2043_v5, %v3271_v17 }
 0x294   : > { %v1388_v13 = vpop.f32.mrf.mxu1 }
 0x295   : > { %1503 = vst.msk [vmem:[%s3274_s6 + $0x38] sm:$0xff] %vm318_vm0, %v1397_v62  ;;  %v1389_v10 = vadd.f32 %v3271_v17, %v1388_v13 }
 0x297   : > { %1501 = vst.msk [vmem:[%s3274_s6 + $0x28] sm:$0xff] %vm318_vm0, %v1389_v10 }
 0x2a4   : > { %v2046_v29 = vpop.f32.mrf.mxu1 }
 0x2a5   : > { %v1410_v6 = vadd.f32 %v2046_v29, %v3271_v17 }
 0x2a6   : > { %v1401_v25 = vpop.f32.mrf.mxu1 }
 0x2a7   : > { %1506 = vst.msk [vmem:[%s3274_s6 + $0x50] sm:$0xff] %vm318_vm0, %v1410_v6  ;;  %v1402_v59 = vadd.f32 %v3271_v17, %v1401_v25 }
 0x2a8   : > { %v2047_v61 = vpop.f32.mrf.mxu1 }
 0x2a9   : > { %1504 = vst.msk [vmem:[%s3274_s6 + $0x40] sm:$0xff] %vm318_vm0, %v1402_v59  ;;  %v1413_v11 = vadd.f32 %v2047_v61, %v3271_v17 }
 0x2aa   : > { %v1404_v63 = vpop.f32.mrf.mxu1 }
 0x2ab   : > { %1507 = vst.msk [vmem:[%s3274_s6 + $0x58] sm:$0xff] %vm318_vm0, %v1413_v11  ;;  %v1405_v45 = vadd.f32 %v3271_v17, %v1404_v63 }
 0x2ad   : > { %1505 = vst.msk [vmem:[%s3274_s6 + $0x48] sm:$0xff] %vm318_vm0, %v1405_v45 }
 0x2b8   : > { %v2050_v50 = vpop.f32.mrf.mxu1 }
 0x2b9   : > { %v1426_v40 = vadd.f32 %v2050_v50, %v3271_v17 }
 0x2ba   : > { %v1417_v52 = vpop.f32.mrf.mxu1 }
 0x2bb   : > { %1510 = vst.msk [vmem:[%s3274_s6 + $0x70] sm:$0xff] %vm318_vm0, %v1426_v40  ;;  %v1418_v8 = vadd.f32 %v3271_v17, %v1417_v52 }
 0x2bc   : > { %v2051_v33 = vpop.f32.mrf.mxu1 }
 0x2bd   : > { %1508 = vst.msk [vmem:[%s3274_s6 + $0x60] sm:$0xff] %vm318_vm0, %v1418_v8  ;;  %v1429_v37 = vadd.f32 %v2051_v33, %v3271_v17 }
 0x2be   : > { %v1420_v16 = vpop.f32.mrf.mxu1 }
 0x2bf   : > { %1511 = vst.msk [vmem:[%s3274_s6 + $0x78] sm:$0xff] %vm318_vm0, %v1429_v37  ;;  %v1421_v7 = vadd.f32 %v3271_v17, %v1420_v16 }
 0x2c1   : > { %1509 = vst.msk [vmem:[%s3274_s6 + $0x68] sm:$0xff] %vm318_vm0, %v1421_v7 }
 0x2c9   : > { %v2054_v53 = vpop.f32.mrf.mxu1 }
 0x2ca   : > { %v1442_v51 = vadd.f32 %v2054_v53, %v3271_v17 }
 0x2cb   : > { %v1433_v2 = vpop.f32.mrf.mxu1 }
 0x2cc   : > { %1514 = vst.msk [vmem:[%s3274_s6 + $0x90] sm:$0xff] %vm318_vm0, %v1442_v51  ;;  %v1434_v56 = vadd.f32 %v3271_v17, %v1433_v2 }
 0x2cd   : > { %v2055_v48 = vpop.f32.mrf.mxu1 }
 0x2ce   : > { %1512 = vst.msk [vmem:[%s3274_s6 + $0x80] sm:$0xff] %vm318_vm0, %v1434_v56  ;;  %v1445_v34 = vadd.f32 %v2055_v48, %v3271_v17 }
 0x2cf   : > { %v1436_v27 = vpop.f32.mrf.mxu1 }
 0x2d0   : > { %1515 = vst.msk [vmem:[%s3274_s6 + $0x98] sm:$0xff] %vm318_vm0, %v1445_v34  ;;  %v1437_v41 = vadd.f32 %v3271_v17, %v1436_v27 }
 0x2d2   : > { %1513 = vst.msk [vmem:[%s3274_s6 + $0x88] sm:$0xff] %vm318_vm0, %v1437_v41 }
 0x2d8   : > { %v2058_v15 = vpop.f32.mrf.mxu1 }
 0x2d9   : > { %v1458_v38 = vadd.f32 %v2058_v15, %v3271_v17 }
 0x2da   : > { %v1449_v57 = vpop.f32.mrf.mxu1 }
 0x2db   : > { %1518 = vst.msk [vmem:[%s3274_s6 + $0xb0] sm:$0xff] %vm318_vm0, %v1458_v38  ;;  %v1450_v12 = vadd.f32 %v3271_v17, %v1449_v57 }
 0x2dc   : > { %v2059_v1 = vpop.f32.mrf.mxu1 }
 0x2dd   : > { %1516 = vst.msk [vmem:[%s3274_s6 + $0xa0] sm:$0xff] %vm318_vm0, %v1450_v12  ;;  %v1461_v35 = vadd.f32 %v2059_v1, %v3271_v17 }
 0x2de   : > { %v1452_v55 = vpop.f32.mrf.mxu1 }
 0x2df   : > { %1519 = vst.msk [vmem:[%s3274_s6 + $0xb8] sm:$0xff] %vm318_vm0, %v1461_v35  ;;  %v1453_v54 = vadd.f32 %v3271_v17, %v1452_v55 }
 0x2e0   : > { %v2062_v18 = vpop.f32.mrf.mxu1 }
 0x2e1   : > { %1517 = vst.msk [vmem:[%s3274_s6 + $0xa8] sm:$0xff] %vm318_vm0, %v1453_v54  ;;  %v1474_v14 = vadd.f32 %v2062_v18, %v3271_v17 }
 0x2e2   : > { %v1465_v44 = vpop.f32.mrf.mxu1 }
 0x2e3   : > { %1522 = vst.msk [vmem:[%s3274_s6 + $0xd0] sm:$0xff] %vm318_vm0, %v1474_v14  ;;  %v1466_v19 = vadd.f32 %v3271_v17, %v1465_v44 }
 0x2e4   : > { %v2063_v24 = vpop.f32.mrf.mxu1 }
 0x2e5   : > { %1520 = vst.msk [vmem:[%s3274_s6 + $0xc0] sm:$0xff] %vm318_vm0, %v1466_v19  ;;  %v1477_v30 = vadd.f32 %v2063_v24, %v3271_v17 }
 0x2e6   : > { %v1468_v0 = vpop.f32.mrf.mxu1 }
 0x2e7   : > { %1523 = vst.msk [vmem:[%s3274_s6 + $0xd8] sm:$0xff] %vm318_vm0, %v1477_v30  ;;  %v1469_v21 = vadd.f32 %v3271_v17, %v1468_v0 }
 0x2e9   : > { %1521 = vst.msk [vmem:[%s3274_s6 + $0xc8] sm:$0xff] %vm318_vm0, %v1469_v21 }
 0x2ee   : > { %v2066_v32 = vpop.f32.mrf.mxu1 }
 0x2ef   : > { %v1490_v47 = vadd.f32 %v2066_v32, %v3271_v17 }
 0x2f0   : > { %v1481_v23 = vpop.f32.mrf.mxu1 }
 0x2f1   : > { %1526 = vst.msk [vmem:[%s3274_s6 + $0xf0] sm:$0xff] %vm318_vm0, %v1490_v47  ;;  %v1482_v60 = vadd.f32 %v3271_v17, %v1481_v23 }
 0x2f2   : > { %v2067_v46 = vpop.f32.mrf.mxu1 }
 0x2f3   : > { %1524 = vst.msk [vmem:[%s3274_s6 + $0xe0] sm:$0xff] %vm318_vm0, %v1482_v60  ;;  %v1493_v4 = vadd.f32 %v2067_v46, %v3271_v17  ;;  %1534 = sbr.rel (!%p2519_p4) target bundleno = 808 (0x328), region = 44 }
 0x2f4   : > { %v1484_v22 = vpop.f32.mrf.mxu1 }
 0x2f5   : > { %1527 = vst.msk [vmem:[%s3274_s6 + $0xf8] sm:$0xff] %vm318_vm0, %v1493_v4  ;;  %v1485_v31 = vadd.f32 %v3271_v17, %v1484_v22 }
 0x2f7   : > { %1525 = vst.msk [vmem:[%s3274_s6 + $0xe8] sm:$0xff] %vm318_vm0, %v1485_v31 }
 0x2f8   : > { %s3549_s18 = smov (!%p1537_p8, %s1536_s18), 32 }
 0x2f9   : > { %s1924_s11 = sshll.u32 %s3549_s18, 7 }
 0x2fa   : > { %p1927_p9 = scmp.eq.s32.totalorder %s1924_s11, 0 }
 0x2fb   : > { %s3384_s12 = sshrl.u32 (!%p1927_p9), %s3549_s18, 5 }
 0x2fc   : > { %1545 = sbr.rel (%p1927_p9) target bundleno = 808 (0x328), region = 48  ;;  %p1928_p10 = scmp.le.s32.totalorder (!%p1927_p9), %s3384_s12, 0 }
 0x301   : > { %1824 = sbr.rel (%p1928_p10) target bundleno = 791 (0x317), region = 126  ;;  %s3540_s21 = smov (!%p1928_p10), %s3378_s10 }
 0x302   : > { %s3541_s26 = smov (!%p1928_p10), %s3274_s6  ;;  %s3393_s29 = smov (!%p1928_p10), 0  }
 0x303   : > { %s3395_s13 = smov (!%p1928_p10), 0  }
 0x306 LB: >> { %v1670_v17 = vld [vmem:[%s2438_s26] sm:$0xff]  ;;  %v1672_v20 = vld [vmem:[%s2438_s26 + $0x8] sm:$0xff]  ;;  %v1674_v9 = vld [vmem:[%s2438_s26 + $0x10] sm:$0xff]  ;;  %s1734_s14 = sadd.s32 1, %s2442_s29  ;;  %s1664_s13 = sadd.s32 1, %s2446_s13   ;;  %s2446_s13 = sphi %s3395_s13, %s1664_s13   ;;  %s2442_s29 = sphi %s3393_s29, %s3544_s29   ;;  %s2438_s26 = sphi %s3541_s26, %s3543_s26   ;;  %s2434_s21 = sphi %s3540_s21, %s3542_s21  }
 0x307   : >> { %1671 = vst [vmem:[%s2434_s21] sm:$0xff] %v1670_v17  ;;  %1673 = vst [vmem:[%s2434_s21 + $0x8] sm:$0xff] %v1672_v20  ;;  %v1676_v43 = vld [vmem:[%s2438_s26 + $0x18] sm:$0xff]  ;;  %v1678_v58 = vld [vmem:[%s2438_s26 + $0x20] sm:$0xff]  ;;  %p1735_p11 = scmp.ge.s32.totalorder %s1734_s14, %s3384_s12  ;;  %p1663_p12 = scmp.ge.s32.totalorder %s1664_s13, %s3384_s12 }
 0x308   : >> { %1675 = vst [vmem:[%s2434_s21 + $0x10] sm:$0xff] %v1674_v9  ;;  %v1680_v42 = vld [vmem:[%s2438_s26 + $0x28] sm:$0xff]  ;;  %1677 = vst [vmem:[%s2434_s21 + $0x18] sm:$0xff] %v1676_v43  ;;  %v1682_v49 = vld [vmem:[%s2438_s26 + $0x30] sm:$0xff] }
 0x309   : >> { %1679 = vst [vmem:[%s2434_s21 + $0x20] sm:$0xff] %v1678_v58  ;;  %1681 = vst [vmem:[%s2434_s21 + $0x28] sm:$0xff] %v1680_v42  ;;  %v1684_v28 = vld [vmem:[%s2438_s26 + $0x38] sm:$0xff]  ;;  %v1686_v39 = vld [vmem:[%s2438_s26 + $0x40] sm:$0xff]  ;;  %s3551_s14 = smov (%p1735_p11, %s1734_s14), 0 }
 0x30a   : >> { %1683 = vst [vmem:[%s2434_s21 + $0x30] sm:$0xff] %v1682_v49  ;;  %1685 = vst [vmem:[%s2434_s21 + $0x38] sm:$0xff] %v1684_v28  ;;  %v1688_v36 = vld [vmem:[%s2438_s26 + $0x48] sm:$0xff]  ;;  %v1690_v26 = vld [vmem:[%s2438_s26 + $0x50] sm:$0xff]  ;;  %s1929_s15 = sshll.u32 %s3551_s14, 8  ;;  %s3544_s29 = smov %s3551_s14 }
 0x30b   : >> { %1687 = vst [vmem:[%s2434_s21 + $0x40] sm:$0xff] %v1686_v39  ;;  %v1692_v3 = vld [vmem:[%s2438_s26 + $0x58] sm:$0xff]  ;;  %1689 = vst [vmem:[%s2434_s21 + $0x48] sm:$0xff] %v1688_v36  ;;  %v1694_v5 = vld [vmem:[%s2438_s26 + $0x60] sm:$0xff]  ;;  %s3451_s16 = scalar_lea.vmem %s3274_s6, %s1929_s15 [#allocation2]   ;;  %s1740_s17 = scalar_lea.vmem %s3378_s10, %s1929_s15  }
 0x30c   : >> { %1691 = vst [vmem:[%s2434_s21 + $0x50] sm:$0xff] %v1690_v26  ;;  %1693 = vst [vmem:[%s2434_s21 + $0x58] sm:$0xff] %v1692_v3  ;;  %v1696_v62 = vld [vmem:[%s2438_s26 + $0x68] sm:$0xff]  ;;  %v1698_v13 = vld [vmem:[%s2438_s26 + $0x70] sm:$0xff] }
 0x30d   : >> { %1695 = vst [vmem:[%s2434_s21 + $0x60] sm:$0xff] %v1694_v5  ;;  %1697 = vst [vmem:[%s2434_s21 + $0x68] sm:$0xff] %v1696_v62  ;;  %v1700_v10 = vld [vmem:[%s2438_s26 + $0x78] sm:$0xff]  ;;  %v1702_v29 = vld [vmem:[%s2438_s26 + $0x80] sm:$0xff] }
 0x30e   : >> { %1699 = vst [vmem:[%s2434_s21 + $0x70] sm:$0xff] %v1698_v13  ;;  %v1704_v6 = vld [vmem:[%s2438_s26 + $0x88] sm:$0xff]  ;;  %1701 = vst [vmem:[%s2434_s21 + $0x78] sm:$0xff] %v1700_v10  ;;  %v1706_v25 = vld [vmem:[%s2438_s26 + $0x90] sm:$0xff] }
 0x30f   : >> { %1703 = vst [vmem:[%s2434_s21 + $0x80] sm:$0xff] %v1702_v29  ;;  %1705 = vst [vmem:[%s2434_s21 + $0x88] sm:$0xff] %v1704_v6  ;;  %v1708_v59 = vld [vmem:[%s2438_s26 + $0x98] sm:$0xff]  ;;  %v1710_v61 = vld [vmem:[%s2438_s26 + $0xa0] sm:$0xff] }
 0x310   : >> { %1707 = vst [vmem:[%s2434_s21 + $0x90] sm:$0xff] %v1706_v25  ;;  %1709 = vst [vmem:[%s2434_s21 + $0x98] sm:$0xff] %v1708_v59  ;;  %v1712_v11 = vld [vmem:[%s2438_s26 + $0xa8] sm:$0xff]  ;;  %v1714_v63 = vld [vmem:[%s2438_s26 + $0xb0] sm:$0xff] }
 0x311   : >> { %1711 = vst [vmem:[%s2434_s21 + $0xa0] sm:$0xff] %v1710_v61  ;;  %v1716_v45 = vld [vmem:[%s2438_s26 + $0xb8] sm:$0xff]  ;;  %1713 = vst [vmem:[%s2434_s21 + $0xa8] sm:$0xff] %v1712_v11  ;;  %v1718_v50 = vld [vmem:[%s2438_s26 + $0xc0] sm:$0xff] }
 0x312   : >> { %1715 = vst [vmem:[%s2434_s21 + $0xb0] sm:$0xff] %v1714_v63  ;;  %1717 = vst [vmem:[%s2434_s21 + $0xb8] sm:$0xff] %v1716_v45  ;;  %v1720_v40 = vld [vmem:[%s2438_s26 + $0xc8] sm:$0xff]  ;;  %v1722_v52 = vld [vmem:[%s2438_s26 + $0xd0] sm:$0xff]  ;;  %1666 = sbr.rel (!%p1663_p12) target bundleno = 774 (0x306), region = 132 }
 0x313   : >> { %1719 = vst [vmem:[%s2434_s21 + $0xc0] sm:$0xff] %v1718_v50  ;;  %1721 = vst [vmem:[%s2434_s21 + $0xc8] sm:$0xff] %v1720_v40  ;;  %v1724_v8 = vld [vmem:[%s2438_s26 + $0xd8] sm:$0xff]  ;;  %v1726_v33 = vld [vmem:[%s2438_s26 + $0xe0] sm:$0xff] }
 0x314   : >> { %1723 = vst [vmem:[%s2434_s21 + $0xd0] sm:$0xff] %v1722_v52  ;;  %v1728_v37 = vld [vmem:[%s2438_s26 + $0xe8] sm:$0xff]  ;;  %1725 = vst [vmem:[%s2434_s21 + $0xd8] sm:$0xff] %v1724_v8  ;;  %v1730_v16 = vld [vmem:[%s2438_s26 + $0xf0] sm:$0xff] }
 0x315   : >> { %1727 = vst [vmem:[%s2434_s21 + $0xe0] sm:$0xff] %v1726_v33  ;;  %1729 = vst [vmem:[%s2434_s21 + $0xe8] sm:$0xff] %v1728_v37  ;;  %v1732_v7 = vld [vmem:[%s2438_s26 + $0xf8] sm:$0xff]  ;;  %s3543_s26 = smov %s3451_s16 }
 0x316   : >> { %1731 = vst [vmem:[%s2434_s21 + $0xf0] sm:$0xff] %v1730_v16  ;;  %1733 = vst [vmem:[%s2434_s21 + $0xf8] sm:$0xff] %v1732_v7  ;;  %s3542_s21 = smov %s1740_s17 }
 0x317 PF: > { %s3492_s20 = sand.u32 31, %s3549_s18   ;;  %s1940_s23 = sshll.u32 %s3384_s12, 8 }
 0x318   : > { %s1745_s24 = scalar_lea.vmem %s3274_s6, %s1940_s23 [#allocation2]   ;;  %s1747_s27 = scalar_lea.vmem %s3378_s10, %s1940_s23  }
 0x319   : > { %p1934_p13 = scmp.le.s32.totalorder %s3492_s20, 0 }
 0x31a   : > { %s2448_s28 = smov (!%p1934_p13), %s1747_s27   ;;  %s2452_s30 = smov (!%p1934_p13), %s1745_s24  }
 0x31b   : > { %1838 = sbr.rel (%p1934_p13) target bundleno = 808 (0x328), region = 137  ;;  %s2456_s7 = smov (!%p1934_p13), 0  }
 0x31c   : > { %s2460_s8 = smov (!%p1934_p13), 0  }
 0x320 LB: >> { %v1757_v53 = vld [vmem:[%s2454_s30] sm:$0xff]  ;;  %s1759_s18 = sadd.s32 1, %s2458_s7  ;;  %s1751_s8 = sadd.s32 1, %s2462_s8   ;;  %s2462_s8 = sphi %s2460_s8, %s1751_s8   ;;  %s2458_s7 = sphi %s2456_s7, %s2457_s7   ;;  %s2454_s30 = sphi %s2452_s30, %s1764_s30   ;;  %s2450_s28 = sphi %s2448_s28, %s1765_s28  }
 0x321   : >> { %1758 = vst [vmem:[%s2450_s28] sm:$0xff] %v1757_v53  ;;  %p1760_p0 = scmp.ge.s32.totalorder %s1759_s18, %s3492_s20  ;;  %p1750_p1 = scmp.ge.s32.totalorder %s1751_s8, %s3492_s20 }
 0x323   : >> { %s3553_s18 = smov (%p1760_p0, %s1759_s18), 0  ;;  %1753 = sbr.rel (!%p1750_p1) target bundleno = 800 (0x320), region = 143 }
 0x324   : >> { %s1935_s6 = sshll.u32 %s3553_s18, 3  ;;  %s2457_s7 = smov %s3553_s18  }
 0x325   : >> { %s1764_s30 = scalar_lea.vmem %s1745_s24, %s1935_s6 [#allocation2]   ;;  %s1765_s28 = scalar_lea.vmem %s1747_s27, %s1935_s6  }
 0x328 PF: > { %p12_p2 = scmp.ge.s32.totalorder %s2509_s22, 6   ;;  %s3545_s18 = smov %s2426_s19 }
 0x329   : > { %s3546_s19 = smov %s2517_s25  ;;  %s3547_s20 = smov %s2509_s22 }
 0x32a   :  { %14 = sbr.rel (!%p12_p2) target bundleno = 2 (0x2), region = 154 }

</bundles_post_ra>
